<compile_context>
chip_gen: v5e
topology: v5e:2x2
jax: 0.10.0
libtpu: 0.0.40
codegen_flags: <defaults>
</compile_context>

<pallas_src>
from typing import NamedTuple

import jax
import jax.numpy as jnp
from jax.experimental import pallas as pl
from jax.experimental.pallas import tpu as pltpu


def _round_up(x, m):
    return ((x + m - 1) // m) * m


def _vmem_capacity_bytes():
    try:
        return int(pltpu.get_tpu_info().vmem_capacity_bytes)
    except Exception:
        return 64 * 1024 * 1024  # conservative fallback: v7x per-TensorCore VMEM


class _PreparedHead(NamedTuple):
    w_t: jax.Array      # (Dp, Np) bf16: transposed + zero-padded weight
    b_p: jax.Array      # (1, Np)  f32 : zero-padded bias
    dim: int
    num_labels: int
    tn: int
    tk: int


def prepare_linear_classifier(weight, bias, *, w_vmem_frac=0.25):
    """One-time (init-time) prep of the frozen classifier parameters.

    weight: (num_labels, dim), bias: (num_labels,).
    Pads to tile multiples, transposes to (dim, num_labels) and casts to bf16 so the
    per-call kernel streams the weight with zero wrapper-side preprocessing.
    """
    N, D = weight.shape
    vmem_cap = _vmem_capacity_bytes()
    w_budget = int(w_vmem_frac * vmem_cap)        # double-buffered weight-slab budget

    Dp0 = _round_up(D, 128)
    Np0 = _round_up(N, 128)

    # N tile: biggest tile that keeps >= 2 'parallel' N steps (v7x megacore) ...
    tn = 128 if Np0 <= 128 else _round_up(-(-Np0 // 2), 128)
    # ... full-D weight rows (max DMA burst) whenever the slab budget allows.
    tk = Dp0

    def w_slab(tn_, tk_):                         # double-buffered bf16 weight tile
        return 2 * tn_ * tk_ * 2

    while tn > 128 and w_slab(tn, tk) > w_budget:  # shrink N tile first ...
        tn -= 128
    while tk > 128 and w_slab(tn, tk) > w_budget:  # ... only then give up full-K
        tk -= 128

    Np = _round_up(N, tn)
    Dp = _round_up(D, tk)

    w_t = jnp.pad(weight, ((0, Np - N), (0, Dp - D))).T.astype(jnp.bfloat16)  # (Dp, Np)
    b_p = jnp.pad(bias, (0, Np - N)).reshape(1, Np).astype(jnp.float32)
    return _PreparedHead(w_t=w_t, b_p=b_p, dim=D, num_labels=N, tn=tn, tk=tk)


def _linear_kernel(x_ref, w_ref, b_ref, o_ref):
    # grid = (B_tiles, N_tiles, K_tiles); the reduction axis (K) is last ("arbitrary").
    k = pl.program_id(2)

    @pl.when(k == 0)
    def _():
        # Fold the bias into the accumulator init (no separate finalize pass).
        o_ref[...] = jnp.broadcast_to(b_ref[...], o_ref.shape)

    # x_ref: (tb, tk) bf16, w_ref: (tk, tn) bf16 (pre-transposed weight, no XLU work).
    o_ref[...] += jnp.dot(x_ref[...], w_ref[...],
                          preferred_element_type=jnp.float32)


def linear_classifier_apply(x, head: _PreparedHead, *, vmem_frac=0.6):
    """x: (B, ...) with prod(trailing dims) == head.dim. Returns (B, num_labels) f32."""
    B = x.shape[0]
    x2d = x.reshape(B, -1)                        # == x.view(B, -1)
    D = x2d.shape[1]
    assert D == head.dim, (D, head.dim)

    tn, tk = head.tn, head.tk
    Dp, Np = head.w_t.shape
    vmem_cap = _vmem_capacity_bytes()

    # B tiling: small batches stay a single resident tile; large batches get a
    # 'parallel' B grid axis so x/out tiles never blow the VMEM slab.
    tb = B if B <= 256 else 256

    def req_bytes(tb_):
        return (2 * tb_ * tk * 2          # x tile,    bf16, double buffered
                + 2 * tk * tn * 2         # W tile,    bf16, double buffered
                + 2 * tb_ * tn * 4        # out tile,  f32,  double buffered
                + 2 * tn * 4)             # bias tile

    while tb > 8 and req_bytes(tb) > vmem_frac * vmem_cap:
        tb = max(8, tb // 2)

    Bp = B if tb == B else _round_up(B, tb)

    # Per-call input prep is x only (tiny); padding is a no-op for aligned shapes.
    x_p = jnp.pad(x2d, ((0, Bp - B), (0, Dp - D))).astype(jnp.bfloat16)

    grid = (Bp // tb, Np // tn, Dp // tk)
    # vmem_limit ~= actual requirement (+margin), not a 32-48 MiB clamp.
    vmem_limit = int(min(req_bytes(tb) * 3 // 2 + (2 << 20), (vmem_cap * 9) // 10))

    out = pl.pallas_call(
        _linear_kernel,
        out_shape=jax.ShapeDtypeStruct((Bp, Np), jnp.float32),
        grid_spec=pltpu.PrefetchScalarGridSpec(
            num_scalar_prefetch=0,
            grid=grid,
            in_specs=[
                pl.BlockSpec((tb, tk), lambda b, j, k: (b, k)),   # x tile (bf16)
                pl.BlockSpec((tk, tn), lambda b, j, k: (k, j)),   # W tile (bf16, (D,N))
                pl.BlockSpec((1, tn), lambda b, j, k: (0, j)),    # bias tile (f32)
            ],
            out_specs=pl.BlockSpec((tb, tn), lambda b, j, k: (b, j)),
        ),
        compiler_params=pltpu.CompilerParams(
            dimension_semantics=("parallel", "parallel", "arbitrary"),
            vmem_limit_bytes=vmem_limit,
        ),
    )(x_p, head.w_t, head.b_p)
    return out[:B, :head.num_labels]


if __name__ == "__main__":
    # Frozen features (B, C, H, W); flattened dim = C*H*W = 1024, num_labels = 1000.
    B, C, H, W = 2, 4, 16, 16
    dim = C * H * W
    num_labels = 1000

    key = jax.random.PRNGKey(0)
    kx, kw = jax.random.split(key)

    x = jax.random.normal(kx, (B, C, H, W), dtype=jnp.float32)
    # Deterministic init matching the module: weight ~ N(0, 0.01), bias = 0.
    weight = 0.01 * jax.random.normal(kw, (num_labels, dim), dtype=jnp.float32)
    bias = jnp.zeros((num_labels,), dtype=jnp.float32)

    # One-time parameter prep (would live in the module's __init__ / param store).
    head = prepare_linear_classifier(weight, bias)

    out = jax.block_until_ready(linear_classifier_apply(x, head))
    assert out.shape == (B, num_labels)

    # References: same bf16 streaming math (tight) and the pure-f32 module math
    # (loose -- accounts for the intentional bf16 weight streaming).
    x2d = x.reshape(B, -1)
    ref_bf16 = jnp.dot(x2d.astype(jnp.bfloat16), weight.astype(jnp.bfloat16).T,
                       preferred_element_type=jnp.float32) + bias
    ref_f32 = x2d @ weight.T + bias
    assert jnp.allclose(out, ref_bf16, atol=1e-3, rtol=1e-3)
    assert jnp.allclose(out, ref_f32, atol=5e-2, rtol=5e-2)

    print("KERNEL_OK")
</pallas_src>

<mosaic_0001>
module attributes {stable_mosaic.version = 11 : i64} {
  func.func @_linear_kernel(%arg0: i32, %arg1: i32, %arg2: i32, %arg3: memref<2x1024xbf16, #tpu.memory_space<vmem>>, %arg4: memref<1024x512xbf16, #tpu.memory_space<vmem>>, %arg5: memref<1x512xf32, #tpu.memory_space<vmem>>, %arg6: memref<2x512xf32, #tpu.memory_space<vmem>>) attributes {dimension_semantics = [#tpu.dimension_semantics<parallel>, #tpu.dimension_semantics<parallel>, #tpu.dimension_semantics<arbitrary>], iteration_bounds = array<i64: 1, 2, 1>, scalar_prefetch = 0 : i64, scratch_operands = 0 : i64, tpu.core_type = #tpu.core_type<tc>, window_params = [{transform_indices = @transform_0, window_bounds = array<i64: 2, 1024>}, {transform_indices = @transform_1, window_bounds = array<i64: 1024, 512>}, {transform_indices = @transform_2, window_bounds = array<i64: 1, 512>}, {transform_indices = @transform_3, window_bounds = array<i64: 2, 512>}]} {
    %c0_i32 = arith.constant 0 : i32
    %0 = arith.cmpi eq, %arg2, %c0_i32 : i32
    %1 = arith.extui %0 : i1 to i32
    %c0_i32_0 = arith.constant 0 : i32
    %2 = arith.cmpi ne, %1, %c0_i32_0 : i32
    scf.if %2 {
      %c0_8 = arith.constant 0 : index
      %c0_9 = arith.constant 0 : index
      %9 = vector.load %arg5[%c0_8, %c0_9] : memref<1x512xf32, #tpu.memory_space<vmem>>, vector<1x512xf32>
      %10 = vector.shape_cast %9 : vector<1x512xf32> to vector<1x512xf32>
      %11 = vector.broadcast %10 : vector<1x512xf32> to vector<2x512xf32>
      %c0_10 = arith.constant 0 : index
      %c0_11 = arith.constant 0 : index
      %12 = vector.load %arg6[%c0_10, %c0_11] : memref<2x512xf32, #tpu.memory_space<vmem>>, vector<2x512xf32>
      tpu.vector_store %arg6[%c0_10, %c0_11], %11 {strides = array<i32>} : memref<2x512xf32, #tpu.memory_space<vmem>>, vector<2x512xf32>,
    } else {
    }
    %c0 = arith.constant 0 : index
    %c0_1 = arith.constant 0 : index
    %3 = vector.load %arg6[%c0, %c0_1] : memref<2x512xf32, #tpu.memory_space<vmem>>, vector<2x512xf32>
    %c0_2 = arith.constant 0 : index
    %c0_3 = arith.constant 0 : index
    %4 = vector.load %arg3[%c0_2, %c0_3] : memref<2x1024xbf16, #tpu.memory_space<vmem>>, vector<2x1024xbf16>
    %c0_4 = arith.constant 0 : index
    %c0_5 = arith.constant 0 : index
    %5 = vector.load %arg4[%c0_4, %c0_5] : memref<1024x512xbf16, #tpu.memory_space<vmem>>, vector<1024x512xbf16>
    %cst = arith.constant dense<0.000000e+00> : vector<2x512xf32>
    %6 = tpu.matmul %4, %5, %cst {dimension_numbers = #tpu.dot_dimension_numbers<[1], [0], [0], [1], [0, 0, 1, 1], [], []>} : vector<2x1024xbf16>, vector<1024x512xbf16>, vector<2x512xf32> -> vector<2x512xf32>
    %7 = arith.addf %3, %6 : vector<2x512xf32>
    %c0_6 = arith.constant 0 : index
    %c0_7 = arith.constant 0 : index
    %8 = vector.load %arg6[%c0_6, %c0_7] : memref<2x512xf32, #tpu.memory_space<vmem>>, vector<2x512xf32>
    tpu.vector_store %arg6[%c0_6, %c0_7], %7 {strides = array<i32>} : memref<2x512xf32, #tpu.memory_space<vmem>>, vector<2x512xf32>,
    return
  }
  func.func @transform_0(%arg0: i32, %arg1: i32, %arg2: i32) -> (i32, i32) {
    %c0_i32 = arith.constant 0 : i32
    return %arg0, %arg2 : i32, i32
  }
  func.func @transform_1(%arg0: i32, %arg1: i32, %arg2: i32) -> (i32, i32) {
    %c0_i32 = arith.constant 0 : i32
    return %arg2, %arg1 : i32, i32
  }
  func.func @transform_2(%arg0: i32, %arg1: i32, %arg2: i32) -> (i32, i32) {
    %c0_i32 = arith.constant 0 : i32
    %c0_i32_0 = arith.constant 0 : i32
    return %c0_i32, %arg1 : i32, i32
  }
  func.func @transform_3(%arg0: i32, %arg1: i32, %arg2: i32) -> (i32, i32) {
    %c0_i32 = arith.constant 0 : i32
    return %arg0, %arg1 : i32, i32
  }
}

</mosaic_0001>

<bundles_post_ra>
// kernel: tpu_custom_call.1
= control target key start
LH: loop header
LB: loop body
LE: loop exit
PB: predicated region body
PF: predicated region fallthrough
CT: control target
= control target key end

     0   :  { %8 = vsyncpa [#allocation3], 0  ;;  %s4781_s0 = inlined_call_operand.hbm [shape: bf16[2,1024], index: 0, kind: input, shape index: {}]   ;;  %s4782_s1 = inlined_call_operand.hbm [shape: bf16[1024,1024], index: 1, kind: input, shape index: {}]   ;;  %s4783_s2 = inlined_call_operand.hbm [shape: f32[1,1024], index: 2, kind: input, shape index: {}]   ;;  %s4784_s3 = inlined_call_operand.hbm [shape: f32[2,1024], index: 3, kind: output, shape index: {}]  }
   0x1   :  { %9 = vsyncpa [#allocation6], 0 }
   0x2   :  { %11 = vsyncpa [#allocation6 + $0x1], 0 }
   0x3   :  { %12 = vsyncpa [#allocation4], 0 }
   0x4   :  { %14 = vsyncpa [#allocation4 + $0x1], 0  ;;  %s4028_s12 = smov 0   ;;  %s4030_s13 = smov 0  }
   0x5   :  { %s4032_s14 = smov 0   ;;  %s4034_s15 = smov 0  }
   0x6   :  { %s4036_s16 = smov 0   ;;  %s4038_s17 = smov 0  }
   0x7 LB: > { %s35_s18 = sadd.s32 1, %s3998_s16  ;;  %s76_s19 = sadd.s32 1, %s3990_s14  ;;  %s4002_s17 = sphi %s4038_s17, %s20_s17   ;;  %s3998_s16 = sphi %s4036_s16, %s4795_s16   ;;  %s3994_s15 = sphi %s4034_s15, %s4794_s15   ;;  %s3990_s14 = sphi %s4032_s14, %s4793_s14   ;;  %s3986_s13 = sphi %s4030_s13, %s4792_s13   ;;  %s3982_s12 = sphi %s4028_s12, %s4791_s12  }
   0x8   : > { %p37_p0 = scmp.ge.s32.totalorder %s35_s18, 2  ;;  %p83_p1 = scmp.ne.s32.totalorder %s3990_s14, %s3986_s13 }
   0x9   : > { %p84_p2 = scmp.eq.s32.totalorder %s4002_s17, 0  ;;  %p2439_p3 = scmp.ge.s32.totalorder %s4002_s17, 2 }
   0xa   : > { %s4797_s18 = smov (%p37_p0, %s35_s18), 0  ;;  %p3763_p5 = scmp.lt.s32.totalorder %s4002_s17, 2 }
   0xb   : > { %p4069_p4 = por %p84_p2, %p83_p1  ;;  %s72_s21 = ssub.s32 %s3998_s16, %s4797_s18 }
   0xc   : > { %s183_s22 = sand.u32 1, %s4002_s17   ;;  %p74_p6 = scmp.eq.s32.totalorder %s72_s21, 0 }
   0xd   : > { %s185_s23 = sand.u32 1, %s3990_s14   ;;  %s3479_s24 = sshll.u32 %s3998_s16, 4 }
   0xe   : > { %s4080_s25 = scalar_select %p74_p6, %s3990_s14, %s76_s19  }
   0xf   : > { %s2440_s26 = sshll.u32 %s185_s23, 11  ;;  %s195_s29 = scalar_lea.hbm %s4782_s1, %s3479_s24 }
  0x10   : > { %s196_s30 = sshll.u32 %s195_s29, 4  ;;  %s187_s4 = scalar_lea.vmem [#allocation5], %s2440_s26  ;;  %s197_s30 = int_to_ptr.hbm [resolvable:$true] %s196_s30 }
  0x11   : > { %s198_s5 = sshll.u32 %s187_s4, 4  ;;  %p4091_p7 = pnand %p3763_p5, %p4069_p4  ;;  %s199_s5 = int_to_ptr.vmem [resolvable:$true] %s198_s5 }
  0x12   : > { %s4095_s7 = scalar_lea.sflag [#allocation6], %s183_s22  ;;  %s4004_s8 = smov 512  }
  0x13   : > { %s4005_s9 = smov 256   ;;  %s4006_s10 = smov 16  }
  0x14   : > { %3754 = dma.hbm_to_vmem [thread:$0]  (!%p4091_p7), %s197_s30, 32768, %s199_s5, %s4095_s7, %s4004_s8, %s4005_s9, %s4006_s10  }
  0x15   : > { %s4101_s11 = sadd.s32 4294967295, %s4002_s17   ;;  %s2436_s19 = sadd.s32 4294967294, %s4002_s17  }
  0x16   : > { %p89_p8 = scmp.ne.s32.totalorder %s3986_s13, %s3982_s12  ;;  %p90_p9 = scmp.eq.s32.totalorder %s4101_s11, 0 }
  0x17   : > { %p141_p10 = scmp.eq.s32.totalorder %s4101_s11, 1  ;;  %p147_p11 = scmp.eq.s32.totalorder %s2436_s19, 1 }
  0x18   : > { %p4110_p12 = por %p90_p9, %p89_p8  ;;  %p2437_p13 = scmp.ge.s32.totalorder %s4002_s17, 1 }
  0x19   : > { %p4118_p0 = por %p141_p10, %p83_p1  ;;  %p4122_p2 = por %p147_p11, %p89_p8 }
  0x1a   : > { %p154_p4 = scmp.lt.s32.totalorder %s4002_s17, 3  ;;  %s170_s27 = sshll.u32 %s4781_s0, 4  ;;  %s171_s27 = int_to_ptr.hbm [resolvable:$true] %s170_s27 }
  0x1b   : > { %s4007_s29 = smov [#allocation2]   ;;  %s2443_s4 = sshll.u32 %s185_s23, 2 }
  0x1c   : > { %p4130_p5 = pnand %p2437_p13, %p154_p4  ;;  %s172_s30 = sshll.u32 %s4007_s29, 4  ;;  %s173_s30 = int_to_ptr.vmem [resolvable:$true] %s172_s30 }
  0x1d   : > { %s2444_s5 = sshll.u32 %s3998_s16, 2  ;;  %s212_s24 = scalar_lea.vmem [#allocation7], %s2443_s4 }
  0x1e   : > { %p3747_p1 = pneg %p4130_p5  ;;  %s216_s10 = scalar_lea.hbm %s4783_s2, %s2444_s5 }
  0x1f   : > { %s218_s19 = sshll.u32 %s216_s10, 4  ;;  %s220_s26 = sshll.u32 %s212_s24, 4  ;;  %s219_s19 = int_to_ptr.hbm [resolvable:$true] %s218_s19  ;;  %s221_s26 = int_to_ptr.vmem [resolvable:$true] %s220_s26 }
  0x20   : > { %p3748_p6 = pnand %p3747_p1, %p90_p9  ;;  %229 = sbr.rel (%p4130_p5) target bundleno = 449 (0x1c1), region = 32 }
  0x21   : > { %3757 = dma.hbm_to_vmem [thread:$0]  (!%p4091_p7), %s219_s19, 64, %s221_s26, %s4095_s7  }
  0x22   : > { %3750 = dma.hbm_to_vmem [thread:$0]  (!%p3748_p6), %s171_s27, 128, %s173_s30, [#allocation3]  }
  0x25   : > { %3969 = dma.done.wait (%p90_p9), [#allocation3], 128  }
  0x26   : > { %3971 = vsyncadd (%p90_p9), [#allocation3], 4294967168  ;;  %s236_s23 = sand.u32 1, %s4101_s11   ;;  %s4155_s29 = sand.u32 1, %s3986_s13  }
  0x27   : > { %s2447_s27 = sshll.u32 %s4155_s29, 11  ;;  %s237_s30 = scalar_lea.sflag [#allocation6], %s236_s23 }
  0x28   : > { %s4158_s6 = scalar_lea.vmem [#allocation5], %s2447_s27 }
  0x29   : > { %3973 = dma.done.wait (%p4110_p12), %s237_s30, 32832  }
  0x2a   : > { %3975 = vsyncadd (%p4110_p12), %s237_s30, 4294934464  ;;  %v2564_v0 = vld [vmem:[%s4158_s6 + $0xe0] sm:$0xf]  ;;  %v3510_v1 = vld [vmem:[%s4158_s6 + $0xec] sm:$0xf0]  ;;  %vm297_vm0 = vcmask 1041408  }
  0x2b   : > { %v2692_v2 = vld [vmem:[%s4158_s6 + $0x1e0] sm:$0xf]  ;;  %v2565_v3 = vor.u32 %v3510_v1, %v2564_v0  ;;  %v3542_v4 = vld [vmem:[%s4158_s6 + $0x1ec] sm:$0xf0]  ;;  %s2448_s7 = sshll.u32 %s4155_s29, 2  ;;  %s2449_s20 = sshll.u32 %s4155_s29, 3 }
  0x2c   : > { %v2820_v5 = vld [vmem:[%s4158_s6 + $0x2e0] sm:$0xf]  ;;  %v3574_v6 = vld [vmem:[%s4158_s6 + $0x2ec] sm:$0xf0]  ;;  %v2693_v7 = vor.u32 %v3542_v4, %v2692_v2  ;;  %s250_s11 = scalar_lea.vmem [#allocation7], %s2448_s7  ;;  %vm299_vm1 = vcmask 1045508  }
  0x2d   : > { %v2821_v8 = vor.u32 %v3574_v6, %v2820_v5  ;;  %v2948_v9 = vld [vmem:[%s4158_s6 + $0x3e0] sm:$0xf]  ;;  %v3606_v10 = vld [vmem:[%s4158_s6 + $0x3ec] sm:$0xf0]  ;;  %1861 = vmatpush.bf16.msra.mxu0 %v2565_v3  ;;  %s3736_s28 = sshll.u32 %s3994_s15, 3  ;;  %vm301_vm2 = vcmask 1043456  }
  0x2e   : > { %v2548_v11 = vld [vmem:[%s4158_s6 + $0xc0] sm:$0xf]  ;;  %v2949_v12 = vor.u32 %v3606_v10, %v2948_v9  ;;  %v3506_v13 = vld [vmem:[%s4158_s6 + $0xcc] sm:$0xf0]  ;;  %1874 = vmatpush.bf16.msra.mxu1 %v2693_v7  ;;  %s2307_s8 = scalar_lea.hbm %s4784_s3, %s3736_s28  ;;  %s278_s15 = scalar_lea.vmem [#allocation8], %s2449_s20 }
  0x2f   : > { %v2676_v14 = vld [vmem:[%s4158_s6 + $0x1c0] sm:$0xf]  ;;  %v3538_v15 = vld [vmem:[%s4158_s6 + $0x1cc] sm:$0xf0]  ;;  %1887 = vmatpush.bf16.msra.mxu2 %v2821_v8  ;;  %v2549_v16 = vor.u32 %v3506_v13, %v2548_v11  ;;  %s2309_s9 = sshll.u32 %s278_s15, 4  ;;  %s2311_s10 = sshll.u32 %s2307_s8, 4  ;;  %s2310_s9 = int_to_ptr.vmem [resolvable:$true] %s2309_s9  ;;  %s2312_s10 = int_to_ptr.hbm [resolvable:$true] %s2311_s10 }
  0x30   : > { %v2677_v17 = vor.u32 %v3538_v15, %v2676_v14  ;;  %v2804_v18 = vld [vmem:[%s4158_s6 + $0x2c0] sm:$0xf]  ;;  %v3570_v19 = vld [vmem:[%s4158_s6 + $0x2cc] sm:$0xf0]  ;;  %1900 = vmatpush.bf16.msra.mxu3 %v2949_v12  ;;  %s2294_s19 = scalar_lea.sflag [#allocation4], %s4155_s29  ;;  %s3930_s24 = sshra.s32 %s2312_s10, 4  ;;  %s3931_s24 = int_to_ptr.hbm [resolvable:$true] %s3930_s24 }
  0x31   : > { %v2932_v20 = vld [vmem:[%s4158_s6 + $0x3c0] sm:$0xf]  ;;  %v2805_v21 = vor.u32 %v3570_v19, %v2804_v18  ;;  %v3602_v22 = vld [vmem:[%s4158_s6 + $0x3cc] sm:$0xf0]  ;;  %1862 = vmatpush.bf16.msra.mxu0 %v2549_v16  ;;  %s3932_s26 = scalar_lea.hbm %s3931_s24, 8  ;;  %s3936_s30 = scalar_lea.hbm %s4784_s3, 16 }
  0x32   : > { %v2532_v23 = vld [vmem:[%s4158_s6 + $0xa0] sm:$0xf]  ;;  %v3502_v24 = vld [vmem:[%s4158_s6 + $0xac] sm:$0xf0]  ;;  %v2933_v25 = vor.u32 %v3602_v22, %v2932_v20  ;;  %1875 = vmatpush.bf16.msra.mxu1 %v2677_v17  ;;  %p3933_p7 = scmp.ne.s32.totalorder %s3931_s24, %s3932_s26  ;;  %p3937_p10 = scmp.lt.s32.totalorder %s3931_s24, %s4784_s3 }
  0x33   : > { %v2660_v26 = vld [vmem:[%s4158_s6 + $0x1a0] sm:$0xf]  ;;  %v3534_v27 = vld [vmem:[%s4158_s6 + $0x1ac] sm:$0xf0]  ;;  %v2533_v29 = vor.u32 %v3502_v24, %v2532_v23  ;;  %1888 = vmatpush.bf16.msra.mxu2 %v2805_v21  ;;  %p3938_p11 = scmp.lt.s32.totalorder %s3936_s30, %s3932_s26 }
  0x34   : > { %v2788_v28 = vld [vmem:[%s4158_s6 + $0x2a0] sm:$0xf]  ;;  %v3566_v30 = vld [vmem:[%s4158_s6 + $0x2ac] sm:$0xf0]  ;;  %v2661_v33 = vor.u32 %v3534_v27, %v2660_v26  ;;  %1901 = vmatpush.bf16.msra.mxu3 %v2933_v25  ;;  %p3934_p8 = pnand %p3933_p7, %p4118_p0 }
  0x35   : > { %v2916_v31 = vld [vmem:[%s4158_s6 + $0x3a0] sm:$0xf]  ;;  %v3598_v32 = vld [vmem:[%s4158_s6 + $0x3ac] sm:$0xf0]  ;;  %v2789_v34 = vor.u32 %v3566_v30, %v2788_v28  ;;  %1863 = vmatpush.bf16.msra.mxu0 %v2533_v29  ;;  %p3939_p12 = por %p3938_p11, %p3937_p10 }
  0x36   : > { %v2516_v35 = vld [vmem:[%s4158_s6 + $0x80] sm:$0xf]  ;;  %v3498_v36 = vld [vmem:[%s4158_s6 + $0x8c] sm:$0xf0]  ;;  %v2917_v38 = vor.u32 %v3598_v32, %v2916_v31  ;;  %1876 = vmatpush.bf16.msra.mxu1 %v2661_v33  ;;  %p3935_p9 = pneg %p3934_p8 }
  0x37   : > { %v2644_v37 = vld [vmem:[%s4158_s6 + $0x180] sm:$0xf]  ;;  %v3530_v39 = vld [vmem:[%s4158_s6 + $0x18c] sm:$0xf0]  ;;  %v2517_v44 = vor.u32 %v3498_v36, %v2516_v35  ;;  %1889 = vmatpush.bf16.msra.mxu2 %v2789_v34 }
  0x38   : > { %v2772_v40 = vld [vmem:[%s4158_s6 + $0x280] sm:$0xf]  ;;  %v3562_v41 = vld [vmem:[%s4158_s6 + $0x28c] sm:$0xf0]  ;;  %v2645_v45 = vor.u32 %v3530_v39, %v2644_v37  ;;  %1902 = vmatpush.bf16.msra.mxu3 %v2917_v38  ;;  %p3940_p13 = pnand %p3939_p12, %p3935_p9 }
  0x39   : > { %v2900_v42 = vld [vmem:[%s4158_s6 + $0x380] sm:$0xf]  ;;  %v3594_v43 = vld [vmem:[%s4158_s6 + $0x38c] sm:$0xf0]  ;;  %v2773_v46 = vor.u32 %v3562_v41, %v2772_v40  ;;  %1864 = vmatpush.bf16.msra.mxu0 %v2517_v44 }
  0x3a   : > { %v2500_v47 = vld [vmem:[%s4158_s6 + $0x60] sm:$0xf]  ;;  %v3494_v48 = vld [vmem:[%s4158_s6 + $0x6c] sm:$0xf0]  ;;  %v2901_v50 = vor.u32 %v3594_v43, %v2900_v42  ;;  %1877 = vmatpush.bf16.msra.mxu1 %v2645_v45 }
  0x3b   : > { %v2628_v49 = vld [vmem:[%s4158_s6 + $0x160] sm:$0xf]  ;;  %v3526_v51 = vld [vmem:[%s4158_s6 + $0x16c] sm:$0xf0]  ;;  %v2501_v56 = vor.u32 %v3494_v48, %v2500_v47  ;;  %1890 = vmatpush.bf16.msra.mxu2 %v2773_v46 }
  0x3c   : > { %v2756_v52 = vld [vmem:[%s4158_s6 + $0x260] sm:$0xf]  ;;  %v3558_v53 = vld [vmem:[%s4158_s6 + $0x26c] sm:$0xf0]  ;;  %v2629_v57 = vor.u32 %v3526_v51, %v2628_v49  ;;  %1903 = vmatpush.bf16.msra.mxu3 %v2901_v50 }
  0x3d   : > { %v2884_v54 = vld [vmem:[%s4158_s6 + $0x360] sm:$0xf]  ;;  %v3590_v55 = vld [vmem:[%s4158_s6 + $0x36c] sm:$0xf0]  ;;  %v2757_v58 = vor.u32 %v3558_v53, %v2756_v52  ;;  %1865 = vmatpush.bf16.msra.mxu0 %v2501_v56 }
  0x3e   : > { %v2484_v59 = vld [vmem:[%s4158_s6 + $0x40] sm:$0xf]  ;;  %v3490_v60 = vld [vmem:[%s4158_s6 + $0x4c] sm:$0xf0]  ;;  %v2885_v62 = vor.u32 %v3590_v55, %v2884_v54  ;;  %1878 = vmatpush.bf16.msra.mxu1 %v2629_v57 }
  0x3f   : > { %v2612_v61 = vld [vmem:[%s4158_s6 + $0x140] sm:$0xf]  ;;  %v3522_v63 = vld [vmem:[%s4158_s6 + $0x14c] sm:$0xf0]  ;;  %v2485_v4 = vor.u32 %v3490_v60, %v2484_v59  ;;  %1891 = vmatpush.bf16.msra.mxu2 %v2757_v58  ;;  %v306_v59 = vld [vmem:[#allocation2] sm:$0xff] }
  0x40   : > { %v2740_v0 = vld [vmem:[%s4158_s6 + $0x240] sm:$0xf]  ;;  %v3554_v1 = vld [vmem:[%s4158_s6 + $0x24c] sm:$0xf0]  ;;  %v2613_v5 = vor.u32 %v3522_v63, %v2612_v61  ;;  %1904 = vmatpush.bf16.msra.mxu3 %v2885_v62  ;;  %564 = vst [vmem:[#allocation1] ss:$9 sm:$0xff] %v306_v59 }
  0x41   : > { %v2868_v2 = vld [vmem:[%s4158_s6 + $0x340] sm:$0xf]  ;;  %v3586_v3 = vld [vmem:[%s4158_s6 + $0x34c] sm:$0xf0]  ;;  %v2741_v6 = vor.u32 %v3554_v1, %v2740_v0  ;;  %1866 = vmatpush.bf16.msra.mxu0 %v2485_v4 }
  0x42   : > { %v2468_v7 = vld [vmem:[%s4158_s6 + $0x20] sm:$0xf]  ;;  %v3486_v8 = vld [vmem:[%s4158_s6 + $0x2c] sm:$0xf0]  ;;  %v2869_v10 = vor.u32 %v3586_v3, %v2868_v2  ;;  %1879 = vmatpush.bf16.msra.mxu1 %v2613_v5 }
  0x43   : > { %v2596_v9 = vld [vmem:[%s4158_s6 + $0x120] sm:$0xf]  ;;  %v3518_v11 = vld [vmem:[%s4158_s6 + $0x12c] sm:$0xf0]  ;;  %v2469_v16 = vor.u32 %v3486_v8, %v2468_v7  ;;  %1892 = vmatpush.bf16.msra.mxu2 %v2741_v6 }
  0x44   : > { %v2724_v12 = vld [vmem:[%s4158_s6 + $0x220] sm:$0xf]  ;;  %v3550_v13 = vld [vmem:[%s4158_s6 + $0x22c] sm:$0xf0]  ;;  %v2597_v19 = vor.u32 %v3518_v11, %v2596_v9  ;;  %1905 = vmatpush.bf16.msra.mxu3 %v2869_v10 }
  0x45   : > { %v2852_v14 = vld [vmem:[%s4158_s6 + $0x320] sm:$0xf]  ;;  %v3582_v15 = vld [vmem:[%s4158_s6 + $0x32c] sm:$0xf0]  ;;  %v2725_v20 = vor.u32 %v3550_v13, %v2724_v12  ;;  %1867 = vmatpush.bf16.msra.mxu0 %v2469_v16 }
  0x46   : > { %v2452_v17 = vld [vmem:[%s4158_s6] sm:$0xf]  ;;  %v3482_v18 = vld [vmem:[%s4158_s6 + $0xc] sm:$0xf0]  ;;  %v2853_v24 = vor.u32 %v3582_v15, %v2852_v14  ;;  %1880 = vmatpush.bf16.msra.mxu1 %v2597_v19 }
  0x47   : > { %v2580_v21 = vld [vmem:[%s4158_s6 + $0x100] sm:$0xf]  ;;  %v3514_v22 = vld [vmem:[%s4158_s6 + $0x10c] sm:$0xf0]  ;;  %v2453_v31 = vor.u32 %v3482_v18, %v2452_v17  ;;  %1893 = vmatpush.bf16.msra.mxu2 %v2725_v20 }
  0x48   : > { %v2708_v23 = vld [vmem:[%s4158_s6 + $0x200] sm:$0xf]  ;;  %v3546_v25 = vld [vmem:[%s4158_s6 + $0x20c] sm:$0xf0]  ;;  %v2581_v35 = vor.u32 %v3514_v22, %v2580_v21  ;;  %1906 = vmatpush.bf16.msra.mxu3 %v2853_v24 }
  0x49   : > { %v2836_v26 = vld [vmem:[%s4158_s6 + $0x300] sm:$0xf]  ;;  %v3578_v27 = vld [vmem:[%s4158_s6 + $0x30c] sm:$0xf0]  ;;  %v2709_v36 = vor.u32 %v3546_v25, %v2708_v23  ;;  %1868 = vmatpush.bf16.msra.mxu0 %v2453_v31 }
  0x4a   : > { %v3076_v28 = vld [vmem:[%s4158_s6 + $0x4e0] sm:$0xf]  ;;  %v3638_v29 = vld [vmem:[%s4158_s6 + $0x4ec] sm:$0xf0]  ;;  %v2837_v39 = vor.u32 %v3578_v27, %v2836_v26  ;;  %1881 = vmatpush.bf16.msra.mxu1 %v2581_v35 }
  0x4b   : > { %v3204_v30 = vld [vmem:[%s4158_s6 + $0x5e0] sm:$0xf]  ;;  %v3670_v32 = vld [vmem:[%s4158_s6 + $0x5ec] sm:$0xf0]  ;;  %v3077_v40 = vor.u32 %v3638_v29, %v3076_v28  ;;  %1894 = vmatpush.bf16.msra.mxu2 %v2709_v36 }
  0x4c   : > { %v3332_v33 = vld [vmem:[%s4158_s6 + $0x6e0] sm:$0xf]  ;;  %v3702_v34 = vld [vmem:[%s4158_s6 + $0x6ec] sm:$0xf0]  ;;  %v3205_v41 = vor.u32 %v3670_v32, %v3204_v30  ;;  %1907 = vmatpush.bf16.msra.mxu3 %v2837_v39 }
  0x4d   : > { %v3460_v37 = vld [vmem:[%s4158_s6 + $0x7e0] sm:$0xf]  ;;  %v3734_v38 = vld [vmem:[%s4158_s6 + $0x7ec] sm:$0xf0]  ;;  %v3333_v42 = vor.u32 %v3702_v34, %v3332_v33  ;;  %1913 = vmatpush.bf16.msrb.mxu0 %v3077_v40 }
  0x4e   : > { %v3060_v43 = vld [vmem:[%s4158_s6 + $0x4c0] sm:$0xf]  ;;  %v3634_v44 = vld [vmem:[%s4158_s6 + $0x4cc] sm:$0xf0]  ;;  %v3461_v46 = vor.u32 %v3734_v38, %v3460_v37  ;;  %1926 = vmatpush.bf16.msrb.mxu1 %v3205_v41 }
  0x4f   : > { %v3188_v45 = vld [vmem:[%s4158_s6 + $0x5c0] sm:$0xf]  ;;  %v3666_v47 = vld [vmem:[%s4158_s6 + $0x5cc] sm:$0xf0]  ;;  %v3061_v52 = vor.u32 %v3634_v44, %v3060_v43  ;;  %1939 = vmatpush.bf16.msrb.mxu2 %v3333_v42 }
  0x50   : > { %v3316_v48 = vld [vmem:[%s4158_s6 + $0x6c0] sm:$0xf]  ;;  %v3698_v49 = vld [vmem:[%s4158_s6 + $0x6cc] sm:$0xf0]  ;;  %v3189_v55 = vor.u32 %v3666_v47, %v3188_v45  ;;  %1952 = vmatpush.bf16.msrb.mxu3 %v3461_v46 }
  0x51   : > { %v3444_v50 = vld [vmem:[%s4158_s6 + $0x7c0] sm:$0xf]  ;;  %v3730_v51 = vld [vmem:[%s4158_s6 + $0x7cc] sm:$0xf0]  ;;  %v3317_v56 = vor.u32 %v3698_v49, %v3316_v48  ;;  %1914 = vmatpush.bf16.msrb.mxu0 %v3061_v52 }
  0x52   : > { %v3044_v53 = vld [vmem:[%s4158_s6 + $0x4a0] sm:$0xf]  ;;  %v3630_v54 = vld [vmem:[%s4158_s6 + $0x4ac] sm:$0xf0]  ;;  %v3445_v60 = vor.u32 %v3730_v51, %v3444_v50  ;;  %1927 = vmatpush.bf16.msrb.mxu1 %v3189_v55 }
  0x53   : > { %v3172_v57 = vld [vmem:[%s4158_s6 + $0x5a0] sm:$0xf]  ;;  %v3662_v58 = vld [vmem:[%s4158_s6 + $0x5ac] sm:$0xf0]  ;;  %v3045_v1 = vor.u32 %v3630_v54, %v3044_v53  ;;  %1940 = vmatpush.bf16.msrb.mxu2 %v3317_v56 }
  0x54   : > { %v3300_v61 = vld [vmem:[%s4158_s6 + $0x6a0] sm:$0xf]  ;;  %v3694_v62 = vld [vmem:[%s4158_s6 + $0x6ac] sm:$0xf0]  ;;  %v3173_v2 = vor.u32 %v3662_v58, %v3172_v57  ;;  %1953 = vmatpush.bf16.msrb.mxu3 %v3445_v60 }
  0x55   : > { %v3428_v63 = vld [vmem:[%s4158_s6 + $0x7a0] sm:$0xf]  ;;  %v3726_v0 = vld [vmem:[%s4158_s6 + $0x7ac] sm:$0xf0]  ;;  %v3301_v3 = vor.u32 %v3694_v62, %v3300_v61  ;;  %1915 = vmatpush.bf16.msrb.mxu0 %v3045_v1  ;;  %v3508_v1 = vld [vmem:[%s4158_s6 + $0xe4] sm:$0xf] }
  0x56   : > { %v3028_v4 = vld [vmem:[%s4158_s6 + $0x480] sm:$0xf]  ;;  %v3626_v5 = vld [vmem:[%s4158_s6 + $0x48c] sm:$0xf0]  ;;  %v3429_v7 = vor.u32 %v3726_v0, %v3428_v63  ;;  %1928 = vmatpush.bf16.msrb.mxu1 %v3173_v2  ;;  %v2566_v2 = vld [vmem:[%s4158_s6 + $0xf0] sm:$0xf0] }
  0x57   : > { %v3156_v6 = vld [vmem:[%s4158_s6 + $0x580] sm:$0xf]  ;;  %v3658_v8 = vld [vmem:[%s4158_s6 + $0x58c] sm:$0xf0]  ;;  %v3029_v14 = vor.u32 %v3626_v5, %v3028_v4  ;;  %1941 = vmatpush.bf16.msrb.mxu2 %v3301_v3  ;;  %v3540_v3 = vld [vmem:[%s4158_s6 + $0x1e4] sm:$0xf] }
  0x58   : > { %v3284_v9 = vld [vmem:[%s4158_s6 + $0x680] sm:$0xf]  ;;  %v3690_v10 = vld [vmem:[%s4158_s6 + $0x68c] sm:$0xf0]  ;;  %v3157_v18 = vor.u32 %v3658_v8, %v3156_v6  ;;  %1954 = vmatpush.bf16.msrb.mxu3 %v3429_v7  ;;  %v2694_v5 = vld [vmem:[%s4158_s6 + $0x1f0] sm:$0xf0] }
  0x59   : > { %v3412_v11 = vld [vmem:[%s4158_s6 + $0x780] sm:$0xf]  ;;  %v3722_v12 = vld [vmem:[%s4158_s6 + $0x78c] sm:$0xf0]  ;;  %v3285_v19 = vor.u32 %v3690_v10, %v3284_v9  ;;  %1916 = vmatpush.bf16.msrb.mxu0 %v3029_v14  ;;  %v3572_v6 = vld [vmem:[%s4158_s6 + $0x2e4] sm:$0xf]  ;;  %v2697_v14 = vor.u32 %v3540_v3, %v2694_v5 }
  0x5a   : > { %v3012_v13 = vld [vmem:[%s4158_s6 + $0x460] sm:$0xf]  ;;  %v3622_v15 = vld [vmem:[%s4158_s6 + $0x46c] sm:$0xf0]  ;;  %v3413_v23 = vor.u32 %v3722_v12, %v3412_v11  ;;  %1929 = vmatpush.bf16.msrb.mxu1 %v3157_v18  ;;  %v2822_v7 = vld [vmem:[%s4158_s6 + $0x2f0] sm:$0xf0] }
  0x5b   : > { %v3140_v16 = vld [vmem:[%s4158_s6 + $0x560] sm:$0xf]  ;;  %v3654_v17 = vld [vmem:[%s4158_s6 + $0x56c] sm:$0xf0]  ;;  %v3013_v29 = vor.u32 %v3622_v15, %v3012_v13  ;;  %1942 = vmatpush.bf16.msrb.mxu2 %v3285_v19  ;;  %v3604_v10 = vld [vmem:[%s4158_s6 + $0x3e4] sm:$0xf]  ;;  %v2569_v13 = vor.u32 %v3508_v1, %v2566_v2  ;;  %v2825_v15 = vor.u32 %v3572_v6, %v2822_v7 }
  0x5c   : > { %v4264_v20 = vld [vmem:[#allocation1 + $0x12] sm:$0xff]  ;;  %v4266_v21 = vld [vmem:[#allocation1] sm:$0xff]  ;;  %v4273_v26 = vld [vmem:[#allocation1 + $0x9] sm:$0xff]  ;;  %v3141_v30 = vor.u32 %v3654_v17, %v3140_v16  ;;  %1955 = vmatpush.bf16.msrb.mxu3 %v3413_v23 }
  0x5d   : > { %v4268_v22 = vld [vmem:[#allocation1 + $0x1b] sm:$0xff]  ;;  %v3268_v24 = vld [vmem:[%s4158_s6 + $0x660] sm:$0xf]  ;;  %1895 = vmatmul.bf16.vlgmr.msra.gmra.mxu2 %v4264_v20  ;;  %1869 = vmatmul.bf16.vlgmr.msra.gmra.mxu0 %v4266_v21  ;;  %v2950_v11 = vld [vmem:[%s4158_s6 + $0x3f0] sm:$0xf0] }
  0x5e   : > { %v3686_v25 = vld [vmem:[%s4158_s6 + $0x66c] sm:$0xf0]  ;;  %v3396_v27 = vld [vmem:[%s4158_s6 + $0x760] sm:$0xf]  ;;  %1908 = vmatmul.bf16.vlgmr.msra.gmra.mxu3 %v4268_v22  ;;  %1882 = vmatmul.bf16.vlgmr.msra.gmra.mxu1 %v4273_v26  ;;  %v3504_v16 = vld [vmem:[%s4158_s6 + $0xc4] sm:$0xf]  ;;  %v2953_v19 = vor.u32 %v3604_v10, %v2950_v11 }
  0x5f   : > { %v3718_v28 = vld [vmem:[%s4158_s6 + $0x76c] sm:$0xf0]  ;;  %v3269_v31 = vor.u32 %v3686_v25, %v3268_v24  ;;  %v2996_v32 = vld [vmem:[%s4158_s6 + $0x440] sm:$0xf]  ;;  %1917 = vmatpush.bf16.msrb.mxu0 %v3013_v29  ;;  %1930 = vmatpush.bf16.msrb.mxu1 %v3141_v30  ;;  %v2550_v17 = vld [vmem:[%s4158_s6 + $0xd0] sm:$0xf0] }
  0x60   : > { %v3618_v33 = vld [vmem:[%s4158_s6 + $0x44c] sm:$0xf0]  ;;  %v3124_v34 = vld [vmem:[%s4158_s6 + $0x540] sm:$0xf]  ;;  %v3397_v35 = vor.u32 %v3718_v28, %v3396_v27  ;;  %v3536_v18 = vld [vmem:[%s4158_s6 + $0x1c4] sm:$0xf]  ;;  %v2553_v30 = vor.u32 %v3504_v16, %v2550_v17 }
  0x61   : > { %v3650_v36 = vld [vmem:[%s4158_s6 + $0x54c] sm:$0xf0]  ;;  %v3252_v37 = vld [vmem:[%s4158_s6 + $0x640] sm:$0xf]  ;;  %v2997_v41 = vor.u32 %v3618_v33, %v2996_v32  ;;  %1943 = vmatpush.bf16.msrb.mxu2 %v3269_v31  ;;  %v2678_v23 = vld [vmem:[%s4158_s6 + $0x1d0] sm:$0xf0] }
  0x62   : > { %v3682_v38 = vld [vmem:[%s4158_s6 + $0x64c] sm:$0xf0]  ;;  %v3380_v39 = vld [vmem:[%s4158_s6 + $0x740] sm:$0xf]  ;;  %v3125_v42 = vor.u32 %v3650_v36, %v3124_v34  ;;  %1956 = vmatpush.bf16.msrb.mxu3 %v3397_v35  ;;  %v3568_v24 = vld [vmem:[%s4158_s6 + $0x2c4] sm:$0xf]  ;;  %v2681_v34 = vor.u32 %v3536_v18, %v2678_v23 }
  0x63   : > { %v3714_v40 = vld [vmem:[%s4158_s6 + $0x74c] sm:$0xf0]  ;;  %v3253_v43 = vor.u32 %v3682_v38, %v3252_v37  ;;  %v2980_v44 = vld [vmem:[%s4158_s6 + $0x420] sm:$0xf]  ;;  %1918 = vmatpush.bf16.msrb.mxu0 %v2997_v41  ;;  %v2806_v25 = vld [vmem:[%s4158_s6 + $0x2d0] sm:$0xf0] }
  0x64   : > { %v3614_v45 = vld [vmem:[%s4158_s6 + $0x42c] sm:$0xf0]  ;;  %v3108_v46 = vld [vmem:[%s4158_s6 + $0x520] sm:$0xf]  ;;  %v3381_v47 = vor.u32 %v3714_v40, %v3380_v39  ;;  %1931 = vmatpush.bf16.msrb.mxu1 %v3125_v42  ;;  %v3600_v27 = vld [vmem:[%s4158_s6 + $0x3c4] sm:$0xf]  ;;  %v2809_v35 = vor.u32 %v3568_v24, %v2806_v25 }
  0x65   : > { %v3646_v48 = vld [vmem:[%s4158_s6 + $0x52c] sm:$0xf0]  ;;  %v3236_v49 = vld [vmem:[%s4158_s6 + $0x620] sm:$0xf]  ;;  %v2981_v53 = vor.u32 %v3614_v45, %v2980_v44  ;;  %1944 = vmatpush.bf16.msrb.mxu2 %v3253_v43  ;;  %v2934_v28 = vld [vmem:[%s4158_s6 + $0x3d0] sm:$0xf0] }
  0x66   : > { %v3678_v50 = vld [vmem:[%s4158_s6 + $0x62c] sm:$0xf0]  ;;  %v3364_v51 = vld [vmem:[%s4158_s6 + $0x720] sm:$0xf]  ;;  %v3109_v56 = vor.u32 %v3646_v48, %v3108_v46  ;;  %1957 = vmatpush.bf16.msrb.mxu3 %v3381_v47  ;;  %v4320_v29 = vld [vmem:[#allocation1 + $0x36] sm:$0xff]  ;;  %v2937_v39 = vor.u32 %v3600_v27, %v2934_v28 }
  0x67   : > { %v3710_v52 = vld [vmem:[%s4158_s6 + $0x72c] sm:$0xf0]  ;;  %v2964_v54 = vld [vmem:[%s4158_s6 + $0x400] sm:$0xf]  ;;  %v3237_v57 = vor.u32 %v3678_v50, %v3236_v49  ;;  %1919 = vmatpush.bf16.msrb.mxu0 %v2981_v53  ;;  %v4322_v31 = vld [vmem:[#allocation1 + $0x24] sm:$0xff] }
  0x68   : > { %v3610_v55 = vld [vmem:[%s4158_s6 + $0x40c] sm:$0xf0]  ;;  %v3092_v58 = vld [vmem:[%s4158_s6 + $0x500] sm:$0xf]  ;;  %v3365_v61 = vor.u32 %v3710_v52, %v3364_v51  ;;  %1932 = vmatpush.bf16.msrb.mxu1 %v3109_v56  ;;  %v3500_v33 = vld [vmem:[%s4158_s6 + $0xa4] sm:$0xf] }
  0x69   : > { %v3642_v59 = vld [vmem:[%s4158_s6 + $0x50c] sm:$0xf0]  ;;  %v3220_v60 = vld [vmem:[%s4158_s6 + $0x600] sm:$0xf]  ;;  %v2965_v4 = vor.u32 %v3610_v55, %v2964_v54  ;;  %1945 = vmatpush.bf16.msrb.mxu2 %v3237_v57  ;;  %v2534_v36 = vld [vmem:[%s4158_s6 + $0xb0] sm:$0xf0] }
  0x6a   : > { %v3674_v62 = vld [vmem:[%s4158_s6 + $0x60c] sm:$0xf0]  ;;  %v3348_v63 = vld [vmem:[%s4158_s6 + $0x700] sm:$0xf]  ;;  %v3093_v8 = vor.u32 %v3642_v59, %v3092_v58  ;;  %1958 = vmatpush.bf16.msrb.mxu3 %v3365_v61  ;;  %v3532_v37 = vld [vmem:[%s4158_s6 + $0x1a4] sm:$0xf]  ;;  %v2537_v45 = vor.u32 %v3500_v33, %v2534_v36 }
  0x6b   : > { %v3706_v0 = vld [vmem:[%s4158_s6 + $0x70c] sm:$0xf0]  ;;  %v3221_v9 = vor.u32 %v3674_v62, %v3220_v60  ;;  %1920 = vmatpush.bf16.msrb.mxu0 %v2965_v4  ;;  %v4329_v38 = vld [vmem:[#allocation1 + $0x2d] sm:$0xff]  ;;  %v2662_v40 = vld [vmem:[%s4158_s6 + $0x1b0] sm:$0xf0] }
  0x6c   : > { %v3349_v12 = vor.u32 %v3706_v0, %v3348_v63  ;;  %1933 = vmatpush.bf16.msrb.mxu1 %v3093_v8  ;;  %v4324_v32 = vld [vmem:[#allocation1 + $0x3f] sm:$0xff]  ;;  %v3564_v41 = vld [vmem:[%s4158_s6 + $0x2a4] sm:$0xf]  ;;  %v2665_v46 = vor.u32 %v3532_v37, %v2662_v40 }
  0x6d   : > { %1946 = vmatpush.bf16.msrb.mxu2 %v3221_v9  ;;  %v2790_v42 = vld [vmem:[%s4158_s6 + $0x2b0] sm:$0xf0]  ;;  %v3596_v43 = vld [vmem:[%s4158_s6 + $0x3a4] sm:$0xf] }
  0x6e   : > { %1959 = vmatpush.bf16.msrb.mxu3 %v3349_v12  ;;  %1921 = vmatmul.bf16.vlgmr.msrb.gmra.mxu0 %v4322_v31  ;;  %v2918_v44 = vld [vmem:[%s4158_s6 + $0x3b0] sm:$0xf0]  ;;  %v2793_v47 = vor.u32 %v3564_v41, %v2790_v42  ;;  %v3496_v48 = vld [vmem:[%s4158_s6 + $0x84] sm:$0xf] }
  0x6f   : > { %1965 = vmatpush.bf16.msra.mxu0 %v2569_v13  ;;  %1934 = vmatmul.bf16.vlgmr.msrb.gmra.mxu1 %v4329_v38  ;;  %v2518_v49 = vld [vmem:[%s4158_s6 + $0x90] sm:$0xf0]  ;;  %v3528_v50 = vld [vmem:[%s4158_s6 + $0x184] sm:$0xf]  ;;  %v2921_v51 = vor.u32 %v3596_v43, %v2918_v44 }
  0x70   : > { %1978 = vmatpush.bf16.msra.mxu1 %v2697_v14  ;;  %1947 = vmatmul.bf16.vlgmr.msrb.gmra.mxu2 %v4320_v29  ;;  %v2646_v52 = vld [vmem:[%s4158_s6 + $0x190] sm:$0xf0]  ;;  %v3560_v53 = vld [vmem:[%s4158_s6 + $0x284] sm:$0xf]  ;;  %v2521_v57 = vor.u32 %v3496_v48, %v2518_v49 }
  0x71   : > { %1991 = vmatpush.bf16.msra.mxu2 %v2825_v15  ;;  %1960 = vmatmul.bf16.vlgmr.msrb.gmra.mxu3 %v4324_v32  ;;  %v2774_v54 = vld [vmem:[%s4158_s6 + $0x290] sm:$0xf0]  ;;  %v3592_v55 = vld [vmem:[%s4158_s6 + $0x384] sm:$0xf]  ;;  %v2649_v58 = vor.u32 %v3528_v50, %v2646_v52 }
  0x72   : > { %2004 = vmatpush.bf16.msra.mxu3 %v2953_v19  ;;  %v2902_v56 = vld [vmem:[%s4158_s6 + $0x390] sm:$0xf0]  ;;  %v2777_v59 = vor.u32 %v3560_v53, %v2774_v54  ;;  %v3492_v60 = vld [vmem:[%s4158_s6 + $0x64] sm:$0xf] }
  0x73   : > { %1966 = vmatpush.bf16.msra.mxu0 %v2553_v30  ;;  %v2502_v61 = vld [vmem:[%s4158_s6 + $0x70] sm:$0xf0]  ;;  %v3524_v62 = vld [vmem:[%s4158_s6 + $0x164] sm:$0xf]  ;;  %v2905_v63 = vor.u32 %v3592_v55, %v2902_v56 }
  0x74   : > { %1979 = vmatpush.bf16.msra.mxu1 %v2681_v34  ;;  %v2630_v0 = vld [vmem:[%s4158_s6 + $0x170] sm:$0xf0]  ;;  %v3556_v1 = vld [vmem:[%s4158_s6 + $0x264] sm:$0xf]  ;;  %v2505_v5 = vor.u32 %v3492_v60, %v2502_v61 }
  0x75   : > { %1992 = vmatpush.bf16.msra.mxu2 %v2809_v35  ;;  %v2758_v2 = vld [vmem:[%s4158_s6 + $0x270] sm:$0xf0]  ;;  %v3588_v3 = vld [vmem:[%s4158_s6 + $0x364] sm:$0xf]  ;;  %v2633_v6 = vor.u32 %v3524_v62, %v2630_v0 }
  0x76   : > { %2005 = vmatpush.bf16.msra.mxu3 %v2937_v39  ;;  %v2886_v4 = vld [vmem:[%s4158_s6 + $0x370] sm:$0xf0]  ;;  %v2761_v7 = vor.u32 %v3556_v1, %v2758_v2  ;;  %v3488_v8 = vld [vmem:[%s4158_s6 + $0x44] sm:$0xf] }
  0x77   : > { %1967 = vmatpush.bf16.msra.mxu0 %v2537_v45  ;;  %v2486_v9 = vld [vmem:[%s4158_s6 + $0x50] sm:$0xf0]  ;;  %v3520_v10 = vld [vmem:[%s4158_s6 + $0x144] sm:$0xf]  ;;  %v2889_v11 = vor.u32 %v3588_v3, %v2886_v4 }
  0x78   : > { %1980 = vmatpush.bf16.msra.mxu1 %v2665_v46  ;;  %v2614_v12 = vld [vmem:[%s4158_s6 + $0x150] sm:$0xf0]  ;;  %v3552_v13 = vld [vmem:[%s4158_s6 + $0x244] sm:$0xf]  ;;  %v2489_v17 = vor.u32 %v3488_v8, %v2486_v9 }
  0x79   : > { %1993 = vmatpush.bf16.msra.mxu2 %v2793_v47  ;;  %v2742_v14 = vld [vmem:[%s4158_s6 + $0x250] sm:$0xf0]  ;;  %v3584_v15 = vld [vmem:[%s4158_s6 + $0x344] sm:$0xf]  ;;  %v2617_v18 = vor.u32 %v3520_v10, %v2614_v12 }
  0x7a   : > { %2006 = vmatpush.bf16.msra.mxu3 %v2921_v51  ;;  %v2870_v16 = vld [vmem:[%s4158_s6 + $0x350] sm:$0xf0]  ;;  %v2745_v19 = vor.u32 %v3552_v13, %v2742_v14  ;;  %v3484_v23 = vld [vmem:[%s4158_s6 + $0x24] sm:$0xf] }
  0x7b   : > { %1968 = vmatpush.bf16.msra.mxu0 %v2521_v57  ;;  %v2470_v24 = vld [vmem:[%s4158_s6 + $0x30] sm:$0xf0]  ;;  %v3516_v25 = vld [vmem:[%s4158_s6 + $0x124] sm:$0xf]  ;;  %v2873_v27 = vor.u32 %v3584_v15, %v2870_v16 }
  0x7c   : > { %1981 = vmatpush.bf16.msra.mxu1 %v2649_v58  ;;  %v2598_v28 = vld [vmem:[%s4158_s6 + $0x130] sm:$0xf0]  ;;  %v3548_v30 = vld [vmem:[%s4158_s6 + $0x224] sm:$0xf]  ;;  %v2473_v36 = vor.u32 %v3484_v23, %v2470_v24 }
  0x7d   : > { %1994 = vmatpush.bf16.msra.mxu2 %v2777_v59  ;;  %v2726_v33 = vld [vmem:[%s4158_s6 + $0x230] sm:$0xf0]  ;;  %v3580_v34 = vld [vmem:[%s4158_s6 + $0x324] sm:$0xf]  ;;  %v2601_v40 = vor.u32 %v3516_v25, %v2598_v28 }
  0x7e   : > { %2007 = vmatpush.bf16.msra.mxu3 %v2905_v63  ;;  %v2854_v35 = vld [vmem:[%s4158_s6 + $0x330] sm:$0xf0]  ;;  %v3480_v37 = vld [vmem:[%s4158_s6 + $0x4] sm:$0xf]  ;;  %v2729_v41 = vor.u32 %v3548_v30, %v2726_v33 }
  0x7f   : > { %1969 = vmatpush.bf16.msra.mxu0 %v2505_v5  ;;  %v2454_v39 = vld [vmem:[%s4158_s6 + $0x10] sm:$0xf0]  ;;  %v3512_v42 = vld [vmem:[%s4158_s6 + $0x104] sm:$0xf]  ;;  %v2857_v45 = vor.u32 %v3580_v34, %v2854_v35 }
  0x80   : > { %1982 = vmatpush.bf16.msra.mxu1 %v2633_v6  ;;  %v2582_v43 = vld [vmem:[%s4158_s6 + $0x110] sm:$0xf0]  ;;  %v3544_v44 = vld [vmem:[%s4158_s6 + $0x204] sm:$0xf]  ;;  %v2457_v52 = vor.u32 %v3480_v37, %v2454_v39 }
  0x81   : > { %1995 = vmatpush.bf16.msra.mxu2 %v2761_v7  ;;  %v2710_v46 = vld [vmem:[%s4158_s6 + $0x210] sm:$0xf0]  ;;  %v3576_v47 = vld [vmem:[%s4158_s6 + $0x304] sm:$0xf]  ;;  %v2585_v56 = vor.u32 %v3512_v42, %v2582_v43 }
  0x82   : > { %2008 = vmatpush.bf16.msra.mxu3 %v2889_v11  ;;  %v2838_v48 = vld [vmem:[%s4158_s6 + $0x310] sm:$0xf0]  ;;  %v3636_v49 = vld [vmem:[%s4158_s6 + $0x4e4] sm:$0xf]  ;;  %v2713_v57 = vor.u32 %v3544_v44, %v2710_v46 }
  0x83   : > { %1970 = vmatpush.bf16.msra.mxu0 %v2489_v17  ;;  %v3078_v50 = vld [vmem:[%s4158_s6 + $0x4f0] sm:$0xf0]  ;;  %v3668_v51 = vld [vmem:[%s4158_s6 + $0x5e4] sm:$0xf]  ;;  %v2841_v60 = vor.u32 %v3576_v47, %v2838_v48 }
  0x84   : > { %1983 = vmatpush.bf16.msra.mxu1 %v2617_v18  ;;  %v3206_v53 = vld [vmem:[%s4158_s6 + $0x5f0] sm:$0xf0]  ;;  %v3700_v54 = vld [vmem:[%s4158_s6 + $0x6e4] sm:$0xf]  ;;  %v3081_v61 = vor.u32 %v3636_v49, %v3078_v50 }
  0x85   : > { %1996 = vmatpush.bf16.msra.mxu2 %v2745_v19  ;;  %v3334_v55 = vld [vmem:[%s4158_s6 + $0x6f0] sm:$0xf0]  ;;  %v3732_v58 = vld [vmem:[%s4158_s6 + $0x7e4] sm:$0xf]  ;;  %v3209_v62 = vor.u32 %v3668_v51, %v3206_v53 }
  0x86   : > { %2009 = vmatpush.bf16.msra.mxu3 %v2873_v27  ;;  %v3462_v59 = vld [vmem:[%s4158_s6 + $0x7f0] sm:$0xf0]  ;;  %v3337_v63 = vor.u32 %v3700_v54, %v3334_v55  ;;  %v3632_v0 = vld [vmem:[%s4158_s6 + $0x4c4] sm:$0xf] }
  0x87   : > { %1971 = vmatpush.bf16.msra.mxu0 %v2473_v36  ;;  %v3062_v1 = vld [vmem:[%s4158_s6 + $0x4d0] sm:$0xf0]  ;;  %v3664_v2 = vld [vmem:[%s4158_s6 + $0x5c4] sm:$0xf]  ;;  %v3465_v3 = vor.u32 %v3732_v58, %v3462_v59 }
  0x88   : > { %1984 = vmatpush.bf16.msra.mxu1 %v2601_v40  ;;  %v3190_v4 = vld [vmem:[%s4158_s6 + $0x5d0] sm:$0xf0]  ;;  %v3696_v5 = vld [vmem:[%s4158_s6 + $0x6c4] sm:$0xf]  ;;  %v3065_v9 = vor.u32 %v3632_v0, %v3062_v1 }
  0x89   : > { %1997 = vmatpush.bf16.msra.mxu2 %v2729_v41  ;;  %v3318_v6 = vld [vmem:[%s4158_s6 + $0x6d0] sm:$0xf0]  ;;  %v3728_v7 = vld [vmem:[%s4158_s6 + $0x7c4] sm:$0xf]  ;;  %v3193_v10 = vor.u32 %v3664_v2, %v3190_v4 }
  0x8a   : > { %2010 = vmatpush.bf16.msra.mxu3 %v2857_v45  ;;  %v3446_v8 = vld [vmem:[%s4158_s6 + $0x7d0] sm:$0xf0]  ;;  %v3321_v11 = vor.u32 %v3696_v5, %v3318_v6  ;;  %v3628_v12 = vld [vmem:[%s4158_s6 + $0x4a4] sm:$0xf] }
  0x8b   : > { %1972 = vmatpush.bf16.msra.mxu0 %v2457_v52  ;;  %v3046_v13 = vld [vmem:[%s4158_s6 + $0x4b0] sm:$0xf0]  ;;  %v3660_v14 = vld [vmem:[%s4158_s6 + $0x5a4] sm:$0xf]  ;;  %v3449_v15 = vor.u32 %v3728_v7, %v3446_v8 }
  0x8c   : > { %1985 = vmatpush.bf16.msra.mxu1 %v2585_v56  ;;  %v3174_v16 = vld [vmem:[%s4158_s6 + $0x5b0] sm:$0xf0]  ;;  %v3692_v17 = vld [vmem:[%s4158_s6 + $0x6a4] sm:$0xf]  ;;  %v3049_v24 = vor.u32 %v3628_v12, %v3046_v13 }
  0x8d   : > { %1998 = vmatpush.bf16.msra.mxu2 %v2713_v57  ;;  %v3302_v18 = vld [vmem:[%s4158_s6 + $0x6b0] sm:$0xf0]  ;;  %v3724_v19 = vld [vmem:[%s4158_s6 + $0x7a4] sm:$0xf]  ;;  %v3177_v25 = vor.u32 %v3660_v14, %v3174_v16 }
  0x8e   : > { %2011 = vmatpush.bf16.msra.mxu3 %v2841_v60  ;;  %v3430_v23 = vld [vmem:[%s4158_s6 + $0x7b0] sm:$0xf0]  ;;  %1973 = vmatmul.bf16.vlgmr.msra.gmra.mxu0 %v4266_v21  ;;  %v3305_v27 = vor.u32 %v3692_v17, %v3302_v18  ;;  %v3624_v28 = vld [vmem:[%s4158_s6 + $0x484] sm:$0xf] }
  0x8f   : > { %2017 = vmatpush.bf16.msrb.mxu0 %v3081_v61  ;;  %1986 = vmatmul.bf16.vlgmr.msra.gmra.mxu1 %v4273_v26  ;;  %v3030_v30 = vld [vmem:[%s4158_s6 + $0x490] sm:$0xf0]  ;;  %v3656_v33 = vld [vmem:[%s4158_s6 + $0x584] sm:$0xf]  ;;  %v3433_v34 = vor.u32 %v3724_v19, %v3430_v23 }
  0x90   : > { %2030 = vmatpush.bf16.msrb.mxu1 %v3209_v62  ;;  %1999 = vmatmul.bf16.vlgmr.msra.gmra.mxu2 %v4264_v20  ;;  %v3158_v35 = vld [vmem:[%s4158_s6 + $0x590] sm:$0xf0]  ;;  %v3688_v36 = vld [vmem:[%s4158_s6 + $0x684] sm:$0xf]  ;;  %v3033_v41 = vor.u32 %v3624_v28, %v3030_v30  ;;  %v2572_v30 = vld [vmem:[%s4158_s6 + $0xe8] sm:$0xf] }
  0x91   : > { %2043 = vmatpush.bf16.msrb.mxu2 %v3337_v63  ;;  %2012 = vmatmul.bf16.vlgmr.msra.gmra.mxu3 %v4268_v22  ;;  %v3286_v37 = vld [vmem:[%s4158_s6 + $0x690] sm:$0xf0]  ;;  %v3720_v39 = vld [vmem:[%s4158_s6 + $0x784] sm:$0xf]  ;;  %v3161_v42 = vor.u32 %v3656_v33, %v3158_v35  ;;  %v3511_v33 = vld [vmem:[%s4158_s6 + $0xf4] sm:$0xf0] }
  0x92   : > { %2056 = vmatpush.bf16.msrb.mxu3 %v3465_v3  ;;  %v3414_v40 = vld [vmem:[%s4158_s6 + $0x790] sm:$0xf0]  ;;  %v3289_v43 = vor.u32 %v3688_v36, %v3286_v37  ;;  %v3620_v44 = vld [vmem:[%s4158_s6 + $0x464] sm:$0xf]  ;;  %v3543_v36 = vld [vmem:[%s4158_s6 + $0x1f4] sm:$0xf0] }
  0x93   : > { %2018 = vmatpush.bf16.msrb.mxu0 %v3065_v9  ;;  %v3014_v45 = vld [vmem:[%s4158_s6 + $0x470] sm:$0xf0]  ;;  %v3652_v46 = vld [vmem:[%s4158_s6 + $0x564] sm:$0xf]  ;;  %v3417_v47 = vor.u32 %v3720_v39, %v3414_v40  ;;  %v2828_v37 = vld [vmem:[%s4158_s6 + $0x2e8] sm:$0xf] }
  0x94   : > { %2031 = vmatpush.bf16.msrb.mxu1 %v3193_v10  ;;  %v3142_v48 = vld [vmem:[%s4158_s6 + $0x570] sm:$0xf0]  ;;  %v3684_v49 = vld [vmem:[%s4158_s6 + $0x664] sm:$0xf]  ;;  %v3017_v53 = vor.u32 %v3620_v44, %v3014_v45  ;;  %v3575_v39 = vld [vmem:[%s4158_s6 + $0x2f4] sm:$0xf0]  ;;  %v2573_v45 = vor.u32 %v3511_v33, %v2572_v30 }
  0x95   : > { %2044 = vmatpush.bf16.msrb.mxu2 %v3321_v11  ;;  %v3270_v50 = vld [vmem:[%s4158_s6 + $0x670] sm:$0xf0]  ;;  %v3716_v51 = vld [vmem:[%s4158_s6 + $0x764] sm:$0xf]  ;;  %v3145_v54 = vor.u32 %v3652_v46, %v3142_v48  ;;  %v2556_v48 = vld [vmem:[%s4158_s6 + $0xc8] sm:$0xf] }
  0x96   : > { %2057 = vmatpush.bf16.msrb.mxu3 %v3449_v15  ;;  %v3398_v52 = vld [vmem:[%s4158_s6 + $0x770] sm:$0xf0]  ;;  %v3273_v55 = vor.u32 %v3684_v49, %v3270_v50  ;;  %v3616_v56 = vld [vmem:[%s4158_s6 + $0x444] sm:$0xf]  ;;  %v3507_v49 = vld [vmem:[%s4158_s6 + $0xd4] sm:$0xf0] }
  0x97   : > { %2019 = vmatpush.bf16.msrb.mxu0 %v3049_v24  ;;  %v2998_v57 = vld [vmem:[%s4158_s6 + $0x450] sm:$0xf0]  ;;  %v3648_v58 = vld [vmem:[%s4158_s6 + $0x544] sm:$0xf]  ;;  %v3401_v59 = vor.u32 %v3716_v51, %v3398_v52  ;;  %v2684_v50 = vld [vmem:[%s4158_s6 + $0x1c8] sm:$0xf] }
  0x98   : > { %2032 = vmatpush.bf16.msrb.mxu1 %v3177_v25  ;;  %v3126_v60 = vld [vmem:[%s4158_s6 + $0x550] sm:$0xf0]  ;;  %v3680_v61 = vld [vmem:[%s4158_s6 + $0x644] sm:$0xf]  ;;  %v3001_v1 = vor.u32 %v3616_v56, %v2998_v57  ;;  %v3539_v52 = vld [vmem:[%s4158_s6 + $0x1d4] sm:$0xf0]  ;;  %v2557_v57 = vor.u32 %v3507_v49, %v2556_v48 }
  0x99   : > { %2045 = vmatpush.bf16.msrb.mxu2 %v3305_v27  ;;  %v3254_v62 = vld [vmem:[%s4158_s6 + $0x650] sm:$0xf0]  ;;  %v3712_v63 = vld [vmem:[%s4158_s6 + $0x744] sm:$0xf]  ;;  %v3129_v2 = vor.u32 %v3648_v58, %v3126_v60  ;;  %v3603_v56 = vld [vmem:[%s4158_s6 + $0x3d4] sm:$0xf0]  ;;  %v2685_v58 = vor.u32 %v3539_v52, %v2684_v50 }
  0x9a   : > { %2058 = vmatpush.bf16.msrb.mxu3 %v3433_v34  ;;  %v3382_v0 = vld [vmem:[%s4158_s6 + $0x750] sm:$0xf0]  ;;  %v3257_v3 = vor.u32 %v3680_v61, %v3254_v62  ;;  %v3612_v4 = vld [vmem:[%s4158_s6 + $0x424] sm:$0xf]  ;;  %v2700_v34 = vld [vmem:[%s4158_s6 + $0x1e8] sm:$0xf] }
  0x9b   : > { %2020 = vmatpush.bf16.msrb.mxu0 %v3033_v41  ;;  %v2982_v5 = vld [vmem:[%s4158_s6 + $0x430] sm:$0xf0]  ;;  %v3644_v6 = vld [vmem:[%s4158_s6 + $0x524] sm:$0xf]  ;;  %v3385_v7 = vor.u32 %v3712_v63, %v3382_v0  ;;  %v2701_v46 = vor.u32 %v3543_v36, %v2700_v34  ;;  %v2540_v60 = vld [vmem:[%s4158_s6 + $0xa8] sm:$0xf] }
  0x9c   : > { %2033 = vmatpush.bf16.msrb.mxu1 %v3161_v42  ;;  %v3110_v8 = vld [vmem:[%s4158_s6 + $0x530] sm:$0xf0]  ;;  %v3676_v9 = vld [vmem:[%s4158_s6 + $0x624] sm:$0xf]  ;;  %v2985_v13 = vor.u32 %v3612_v4, %v2982_v5  ;;  %v2956_v42 = vld [vmem:[%s4158_s6 + $0x3e8] sm:$0xf] }
  0x9d   : > { %2046 = vmatpush.bf16.msrb.mxu2 %v3289_v43  ;;  %v3238_v10 = vld [vmem:[%s4158_s6 + $0x630] sm:$0xf0]  ;;  %v3708_v11 = vld [vmem:[%s4158_s6 + $0x724] sm:$0xf]  ;;  %v3113_v16 = vor.u32 %v3644_v6, %v3110_v8  ;;  %v3607_v43 = vld [vmem:[%s4158_s6 + $0x3f4] sm:$0xf0] }
  0x9e   : > { %2059 = vmatpush.bf16.msrb.mxu3 %v3417_v47  ;;  %v3366_v12 = vld [vmem:[%s4158_s6 + $0x730] sm:$0xf0]  ;;  %v3608_v14 = vld [vmem:[%s4158_s6 + $0x404] sm:$0xf]  ;;  %v3241_v17 = vor.u32 %v3676_v9, %v3238_v10  ;;  %v2829_v47 = vor.u32 %v3575_v39, %v2828_v37  ;;  %v2957_v51 = vor.u32 %v3607_v43, %v2956_v42  ;;  %v3503_v61 = vld [vmem:[%s4158_s6 + $0xb4] sm:$0xf0] }
  0x9f   : > { %2021 = vmatpush.bf16.msrb.mxu0 %v3017_v53  ;;  %v2966_v15 = vld [vmem:[%s4158_s6 + $0x410] sm:$0xf0]  ;;  %v3640_v18 = vld [vmem:[%s4158_s6 + $0x504] sm:$0xf]  ;;  %v3369_v24 = vor.u32 %v3708_v11, %v3366_v12  ;;  %v2812_v53 = vld [vmem:[%s4158_s6 + $0x2c8] sm:$0xf] }
  0xa0   : > { %2034 = vmatpush.bf16.msrb.mxu1 %v3145_v54  ;;  %v3094_v19 = vld [vmem:[%s4158_s6 + $0x510] sm:$0xf0]  ;;  %v3672_v23 = vld [vmem:[%s4158_s6 + $0x604] sm:$0xf]  ;;  %v2969_v35 = vor.u32 %v3608_v14, %v2966_v15  ;;  %v3571_v54 = vld [vmem:[%s4158_s6 + $0x2d4] sm:$0xf0] }
  0xa1   : > { %2047 = vmatpush.bf16.msrb.mxu2 %v3273_v55  ;;  %v3222_v25 = vld [vmem:[%s4158_s6 + $0x610] sm:$0xf0]  ;;  %v3704_v27 = vld [vmem:[%s4158_s6 + $0x704] sm:$0xf]  ;;  %v3097_v40 = vor.u32 %v3640_v18, %v3094_v19  ;;  %v2940_v55 = vld [vmem:[%s4158_s6 + $0x3c8] sm:$0xf] }
  0xa2   : > { %2060 = vmatpush.bf16.msrb.mxu3 %v3401_v59  ;;  %v3350_v28 = vld [vmem:[%s4158_s6 + $0x710] sm:$0xf0]  ;;  %v3225_v41 = vor.u32 %v3672_v23, %v3222_v25  ;;  %v2813_v59 = vor.u32 %v3571_v54, %v2812_v53  ;;  %v2668_v62 = vld [vmem:[%s4158_s6 + $0x1a8] sm:$0xf]  ;;  %v2941_v63 = vor.u32 %v3603_v56, %v2940_v55  ;;  %v3535_v0 = vld [vmem:[%s4158_s6 + $0x1b4] sm:$0xf0] }
  0xa3   : > { %2022 = vmatpush.bf16.msrb.mxu0 %v3001_v1  ;;  %v3353_v44 = vor.u32 %v3704_v27, %v3350_v28  ;;  %v2796_v1 = vld [vmem:[%s4158_s6 + $0x2a8] sm:$0xf]  ;;  %v3599_v4 = vld [vmem:[%s4158_s6 + $0x3b4] sm:$0xf0]  ;;  %v2669_v5 = vor.u32 %v3535_v0, %v2668_v62 }
  0xa4   : > { %2035 = vmatpush.bf16.msrb.mxu1 %v3129_v2  ;;  %v3567_v2 = vld [vmem:[%s4158_s6 + $0x2b4] sm:$0xf0]  ;;  %v2652_v8 = vld [vmem:[%s4158_s6 + $0x188] sm:$0xf] }
  0xa5   : > { %2048 = vmatpush.bf16.msrb.mxu2 %v3257_v3  ;;  %v2924_v3 = vld [vmem:[%s4158_s6 + $0x3a8] sm:$0xf]  ;;  %v2797_v6 = vor.u32 %v3567_v2, %v2796_v1  ;;  %v3531_v9 = vld [vmem:[%s4158_s6 + $0x194] sm:$0xf0] }
  0xa6   : > { %2061 = vmatpush.bf16.msrb.mxu3 %v3385_v7  ;;  %v2524_v7 = vld [vmem:[%s4158_s6 + $0x88] sm:$0xf]  ;;  %v3563_v11 = vld [vmem:[%s4158_s6 + $0x294] sm:$0xf0]  ;;  %v2653_v14 = vor.u32 %v3531_v9, %v2652_v8 }
  0xa7   : > { %2023 = vmatpush.bf16.msrb.mxu0 %v2985_v13  ;;  %v2780_v10 = vld [vmem:[%s4158_s6 + $0x288] sm:$0xf]  ;;  %v3595_v12 = vld [vmem:[%s4158_s6 + $0x394] sm:$0xf0] }
  0xa8   : > { %2036 = vmatpush.bf16.msrb.mxu1 %v3113_v16  ;;  %v2781_v15 = vor.u32 %v3563_v11, %v2780_v10  ;;  %v2508_v16 = vld [vmem:[%s4158_s6 + $0x68] sm:$0xf]  ;;  %v3527_v23 = vld [vmem:[%s4158_s6 + $0x174] sm:$0xf0] }
  0xa9   : > { %2049 = vmatpush.bf16.msrb.mxu2 %v3241_v17  ;;  %v3495_v17 = vld [vmem:[%s4158_s6 + $0x74] sm:$0xf0]  ;;  %v2636_v18 = vld [vmem:[%s4158_s6 + $0x168] sm:$0xf] }
  0xaa   : > { %2062 = vmatpush.bf16.msrb.mxu3 %v3369_v24  ;;  %v2764_v24 = vld [vmem:[%s4158_s6 + $0x268] sm:$0xf]  ;;  %v3559_v25 = vld [vmem:[%s4158_s6 + $0x274] sm:$0xf0]  ;;  %v2509_v30 = vor.u32 %v3495_v17, %v2508_v16  ;;  %v2637_v33 = vor.u32 %v3527_v23, %v2636_v18 }
  0xab   : > { %2024 = vmatpush.bf16.msrb.mxu0 %v2969_v35  ;;  %v2892_v27 = vld [vmem:[%s4158_s6 + $0x368] sm:$0xf]  ;;  %v3591_v28 = vld [vmem:[%s4158_s6 + $0x374] sm:$0xf0]  ;;  %v2765_v34 = vor.u32 %v3559_v25, %v2764_v24 }
  0xac   : > { %2037 = vmatpush.bf16.msrb.mxu1 %v3097_v40  ;;  %v2492_v35 = vld [vmem:[%s4158_s6 + $0x48] sm:$0xf]  ;;  %v3491_v36 = vld [vmem:[%s4158_s6 + $0x54] sm:$0xf0]  ;;  %v2893_v39 = vor.u32 %v3591_v28, %v2892_v27 }
  0xad   : > { %2050 = vmatpush.bf16.msrb.mxu2 %v3225_v41  ;;  %v2620_v37 = vld [vmem:[%s4158_s6 + $0x148] sm:$0xf]  ;;  %v3523_v40 = vld [vmem:[%s4158_s6 + $0x154] sm:$0xf0] }
  0xae   : > { %2063 = vmatpush.bf16.msrb.mxu3 %v3353_v44  ;;  %2025 = vmatmul.bf16.vlgmr.msrb.gmra.mxu0 %v4322_v31  ;;  %v3499_v31 = vld [vmem:[%s4158_s6 + $0x94] sm:$0xf0]  ;;  %v2748_v41 = vld [vmem:[%s4158_s6 + $0x248] sm:$0xf] }
  0xaf   : > { %2069 = vmatpush.bf16.msra.mxu0 %v2573_v45  ;;  %2038 = vmatmul.bf16.vlgmr.msrb.gmra.mxu1 %v4329_v38  ;;  %v2908_v38 = vld [vmem:[%s4158_s6 + $0x388] sm:$0xf]  ;;  %v2525_v13 = vor.u32 %v3499_v31, %v2524_v7  ;;  %v3555_v42 = vld [vmem:[%s4158_s6 + $0x254] sm:$0xf0]  ;;  %v2493_v45 = vor.u32 %v3491_v36, %v2492_v35 }
  0xb0   : > { %2082 = vmatpush.bf16.msra.mxu1 %v2701_v46  ;;  %2051 = vmatmul.bf16.vlgmr.msrb.gmra.mxu2 %v4320_v29  ;;  %v2541_v29 = vor.u32 %v3503_v61, %v2540_v60  ;;  %v2909_v19 = vor.u32 %v3595_v12, %v2908_v38  ;;  %v2876_v43 = vld [vmem:[%s4158_s6 + $0x348] sm:$0xf]  ;;  %v3587_v44 = vld [vmem:[%s4158_s6 + $0x354] sm:$0xf0]  ;;  %v2621_v46 = vor.u32 %v3523_v40, %v2620_v37 }
  0xb1   : > { %2095 = vmatpush.bf16.msra.mxu2 %v2829_v47  ;;  %2064 = vmatmul.bf16.vlgmr.msrb.gmra.mxu3 %v4324_v32  ;;  %v2925_v32 = vor.u32 %v3599_v4, %v2924_v3  ;;  %v2749_v47 = vor.u32 %v3555_v42, %v2748_v41  ;;  %v2476_v48 = vld [vmem:[%s4158_s6 + $0x28] sm:$0xf]  ;;  %v3487_v49 = vld [vmem:[%s4158_s6 + $0x34] sm:$0xf0] }
  0xb2   : > { %2108 = vmatpush.bf16.msra.mxu3 %v2957_v51  ;;  %v2604_v50 = vld [vmem:[%s4158_s6 + $0x128] sm:$0xf]  ;;  %v2877_v51 = vor.u32 %v3587_v44, %v2876_v43  ;;  %v3519_v52 = vld [vmem:[%s4158_s6 + $0x134] sm:$0xf0] }
  0xb3   : > { %2070 = vmatpush.bf16.msra.mxu0 %v2557_v57  ;;  %v2732_v53 = vld [vmem:[%s4158_s6 + $0x228] sm:$0xf]  ;;  %v3551_v54 = vld [vmem:[%s4158_s6 + $0x234] sm:$0xf0]  ;;  %v2477_v57 = vor.u32 %v3487_v49, %v2476_v48  ;;  %v2605_v60 = vor.u32 %v3519_v52, %v2604_v50 }
  0xb4   : > { %2083 = vmatpush.bf16.msra.mxu1 %v2685_v58  ;;  %v2860_v55 = vld [vmem:[%s4158_s6 + $0x328] sm:$0xf]  ;;  %v3583_v56 = vld [vmem:[%s4158_s6 + $0x334] sm:$0xf0]  ;;  %v2733_v61 = vor.u32 %v3551_v54, %v2732_v53 }
  0xb5   : > { %2096 = vmatpush.bf16.msra.mxu2 %v2813_v59  ;;  %v2460_v58 = vld [vmem:[%s4158_s6 + $0x8] sm:$0xf]  ;;  %v3483_v59 = vld [vmem:[%s4158_s6 + $0x14] sm:$0xf0]  ;;  %v2861_v1 = vor.u32 %v3583_v56, %v2860_v55 }
  0xb6   : > { %2109 = vmatpush.bf16.msra.mxu3 %v2941_v63  ;;  %v2588_v62 = vld [vmem:[%s4158_s6 + $0x108] sm:$0xf]  ;;  %v3515_v63 = vld [vmem:[%s4158_s6 + $0x114] sm:$0xf0]  ;;  %v2461_v7 = vor.u32 %v3483_v59, %v2460_v58 }
  0xb7   : > { %2071 = vmatpush.bf16.msra.mxu0 %v2541_v29  ;;  %v2716_v0 = vld [vmem:[%s4158_s6 + $0x208] sm:$0xf]  ;;  %v3547_v2 = vld [vmem:[%s4158_s6 + $0x214] sm:$0xf0]  ;;  %v2589_v9 = vor.u32 %v3515_v63, %v2588_v62 }
  0xb8   : > { %2084 = vmatpush.bf16.msra.mxu1 %v2669_v5  ;;  %v2844_v3 = vld [vmem:[%s4158_s6 + $0x308] sm:$0xf]  ;;  %v3579_v4 = vld [vmem:[%s4158_s6 + $0x314] sm:$0xf0]  ;;  %v2717_v10 = vor.u32 %v3547_v2, %v2716_v0 }
  0xb9   : > { %2097 = vmatpush.bf16.msra.mxu2 %v2797_v6  ;;  %v3084_v29 = vld [vmem:[%s4158_s6 + $0x4e8] sm:$0xf]  ;;  %v3639_v5 = vld [vmem:[%s4158_s6 + $0x4f4] sm:$0xf0]  ;;  %v2845_v12 = vor.u32 %v3579_v4, %v2844_v3 }
  0xba   : > { %2110 = vmatpush.bf16.msra.mxu3 %v2925_v32  ;;  %v3212_v6 = vld [vmem:[%s4158_s6 + $0x5e8] sm:$0xf]  ;;  %v3671_v31 = vld [vmem:[%s4158_s6 + $0x5f4] sm:$0xf0] }
  0xbb   : > { %2072 = vmatpush.bf16.msra.mxu0 %v2525_v13  ;;  %v3340_v8 = vld [vmem:[%s4158_s6 + $0x6e8] sm:$0xf]  ;;  %v3703_v32 = vld [vmem:[%s4158_s6 + $0x6f4] sm:$0xf0]  ;;  %v3085_v13 = vor.u32 %v3639_v5, %v3084_v29 }
  0xbc   : > { %2085 = vmatpush.bf16.msra.mxu1 %v2653_v14  ;;  %v3468_v11 = vld [vmem:[%s4158_s6 + $0x7e8] sm:$0xf]  ;;  %v3735_v38 = vld [vmem:[%s4158_s6 + $0x7f4] sm:$0xf0]  ;;  %v3213_v14 = vor.u32 %v3671_v31, %v3212_v6 }
  0xbd   : > { %2098 = vmatpush.bf16.msra.mxu2 %v2781_v15  ;;  %v3341_v15 = vor.u32 %v3703_v32, %v3340_v8  ;;  %v3068_v16 = vld [vmem:[%s4158_s6 + $0x4c8] sm:$0xf]  ;;  %v3635_v17 = vld [vmem:[%s4158_s6 + $0x4d4] sm:$0xf0] }
  0xbe   : > { %2111 = vmatpush.bf16.msra.mxu3 %v2909_v19  ;;  %v3196_v18 = vld [vmem:[%s4158_s6 + $0x5c8] sm:$0xf]  ;;  %v3469_v19 = vor.u32 %v3735_v38, %v3468_v11  ;;  %v3667_v23 = vld [vmem:[%s4158_s6 + $0x5d4] sm:$0xf0] }
  0xbf   : > { %2073 = vmatpush.bf16.msra.mxu0 %v2509_v30  ;;  %v3324_v24 = vld [vmem:[%s4158_s6 + $0x6c8] sm:$0xf]  ;;  %v3699_v25 = vld [vmem:[%s4158_s6 + $0x6d4] sm:$0xf0]  ;;  %v3069_v30 = vor.u32 %v3635_v17, %v3068_v16 }
  0xc0   : > { %2086 = vmatpush.bf16.msra.mxu1 %v2637_v33  ;;  %v3452_v27 = vld [vmem:[%s4158_s6 + $0x7c8] sm:$0xf]  ;;  %v3731_v28 = vld [vmem:[%s4158_s6 + $0x7d4] sm:$0xf0]  ;;  %v3197_v33 = vor.u32 %v3667_v23, %v3196_v18 }
  0xc1   : > { %2099 = vmatpush.bf16.msra.mxu2 %v2765_v34  ;;  %v3325_v34 = vor.u32 %v3699_v25, %v3324_v24  ;;  %v3052_v35 = vld [vmem:[%s4158_s6 + $0x4a8] sm:$0xf]  ;;  %v3631_v36 = vld [vmem:[%s4158_s6 + $0x4b4] sm:$0xf0] }
  0xc2   : > { %2112 = vmatpush.bf16.msra.mxu3 %v2893_v39  ;;  %v3180_v37 = vld [vmem:[%s4158_s6 + $0x5a8] sm:$0xf]  ;;  %v3453_v39 = vor.u32 %v3731_v28, %v3452_v27  ;;  %v3663_v40 = vld [vmem:[%s4158_s6 + $0x5b4] sm:$0xf0] }
  0xc3   : > { %2074 = vmatpush.bf16.msra.mxu0 %v2493_v45  ;;  %v3308_v41 = vld [vmem:[%s4158_s6 + $0x6a8] sm:$0xf]  ;;  %v3695_v42 = vld [vmem:[%s4158_s6 + $0x6b4] sm:$0xf0]  ;;  %v3053_v45 = vor.u32 %v3631_v36, %v3052_v35 }
  0xc4   : > { %2087 = vmatpush.bf16.msra.mxu1 %v2621_v46  ;;  %v3436_v43 = vld [vmem:[%s4158_s6 + $0x7a8] sm:$0xf]  ;;  %v3727_v44 = vld [vmem:[%s4158_s6 + $0x7b4] sm:$0xf0]  ;;  %v3181_v46 = vor.u32 %v3663_v40, %v3180_v37 }
  0xc5   : > { %2100 = vmatpush.bf16.msra.mxu2 %v2749_v47  ;;  %v3309_v47 = vor.u32 %v3695_v42, %v3308_v41  ;;  %v3627_v48 = vld [vmem:[%s4158_s6 + $0x494] sm:$0xf0]  ;;  %v3164_v49 = vld [vmem:[%s4158_s6 + $0x588] sm:$0xf] }
  0xc6   : > { %2113 = vmatpush.bf16.msra.mxu3 %v2877_v51  ;;  %v3659_v50 = vld [vmem:[%s4158_s6 + $0x594] sm:$0xf0]  ;;  %v3420_v52 = vld [vmem:[%s4158_s6 + $0x788] sm:$0xf] }
  0xc7   : > { %2075 = vmatpush.bf16.msra.mxu0 %v2477_v57  ;;  %v3691_v51 = vld [vmem:[%s4158_s6 + $0x694] sm:$0xf0]  ;;  %v3165_v54 = vor.u32 %v3659_v50, %v3164_v49  ;;  %v3020_v56 = vld [vmem:[%s4158_s6 + $0x468] sm:$0xf]  ;;  %v3573_v50 = vld [vmem:[%s4158_s6 + $0x2ec] sm:$0xf] }
  0xc8   : > { %2088 = vmatpush.bf16.msra.mxu1 %v2605_v60  ;;  %v3623_v57 = vld [vmem:[%s4158_s6 + $0x474] sm:$0xf0]  ;;  %v3148_v58 = vld [vmem:[%s4158_s6 + $0x568] sm:$0xf] }
  0xc9   : > { %2101 = vmatpush.bf16.msra.mxu2 %v2733_v61  ;;  %v3655_v60 = vld [vmem:[%s4158_s6 + $0x574] sm:$0xf0]  ;;  %v3276_v61 = vld [vmem:[%s4158_s6 + $0x668] sm:$0xf] }
  0xca   : > { %2114 = vmatpush.bf16.msra.mxu3 %v2861_v1  ;;  %v3687_v62 = vld [vmem:[%s4158_s6 + $0x674] sm:$0xf0]  ;;  %v3404_v63 = vld [vmem:[%s4158_s6 + $0x768] sm:$0xf]  ;;  %v3021_v1 = vor.u32 %v3623_v57, %v3020_v56  ;;  %v3149_v2 = vor.u32 %v3655_v60, %v3148_v58 }
  0xcb   : > { %2076 = vmatpush.bf16.msra.mxu0 %v2461_v7  ;;  %v3719_v0 = vld [vmem:[%s4158_s6 + $0x774] sm:$0xf0]  ;;  %v3277_v3 = vor.u32 %v3687_v62, %v3276_v61  ;;  %v3004_v4 = vld [vmem:[%s4158_s6 + $0x448] sm:$0xf]  ;;  %v3505_v61 = vld [vmem:[%s4158_s6 + $0xcc] sm:$0xf] }
  0xcc   : > { %2089 = vmatpush.bf16.msra.mxu1 %v2589_v9  ;;  %v3619_v29 = vld [vmem:[%s4158_s6 + $0x454] sm:$0xf0]  ;;  %v3132_v5 = vld [vmem:[%s4158_s6 + $0x548] sm:$0xf]  ;;  %v3405_v6 = vor.u32 %v3719_v0, %v3404_v63  ;;  %v2558_v62 = vld [vmem:[%s4158_s6 + $0xd8] sm:$0xf0] }
  0xcd   : > { %2102 = vmatpush.bf16.msra.mxu2 %v2717_v10  ;;  %v3651_v7 = vld [vmem:[%s4158_s6 + $0x554] sm:$0xf0]  ;;  %v3260_v31 = vld [vmem:[%s4158_s6 + $0x648] sm:$0xf]  ;;  %v3005_v10 = vor.u32 %v3619_v29, %v3004_v4  ;;  %v3537_v63 = vld [vmem:[%s4158_s6 + $0x1cc] sm:$0xf] }
  0xce   : > { %2115 = vmatpush.bf16.msra.mxu3 %v2845_v12  ;;  %2077 = vmatmul.bf16.vlgmr.msra.gmra.mxu0 %v4266_v21  ;;  %v3437_v21 = vor.u32 %v3727_v44, %v3436_v43  ;;  %v3683_v8 = vld [vmem:[%s4158_s6 + $0x654] sm:$0xf0]  ;;  %v3388_v32 = vld [vmem:[%s4158_s6 + $0x748] sm:$0xf]  ;;  %v3133_v38 = vor.u32 %v3651_v7, %v3132_v5  ;;  %v3601_v4 = vld [vmem:[%s4158_s6 + $0x3cc] sm:$0xf] }
  0xcf   : > { %2121 = vmatpush.bf16.msrb.mxu0 %v3085_v13  ;;  %2090 = vmatmul.bf16.vlgmr.msra.gmra.mxu1 %v4273_v26  ;;  %v3723_v26 = vld [vmem:[%s4158_s6 + $0x794] sm:$0xf0]  ;;  %v3261_v12 = vor.u32 %v3683_v8, %v3260_v31  ;;  %v2988_v13 = vld [vmem:[%s4158_s6 + $0x428] sm:$0xf]  ;;  %v2942_v29 = vld [vmem:[%s4158_s6 + $0x3d8] sm:$0xf0] }
  0xd0   : > { %2134 = vmatpush.bf16.msrb.mxu1 %v3213_v14  ;;  %2103 = vmatmul.bf16.vlgmr.msra.gmra.mxu2 %v4264_v20  ;;  %v3036_v20 = vld [vmem:[%s4158_s6 + $0x488] sm:$0xf]  ;;  %v3421_v59 = vor.u32 %v3723_v26, %v3420_v52  ;;  %v3715_v9 = vld [vmem:[%s4158_s6 + $0x754] sm:$0xf0] }
  0xd1   : > { %2147 = vmatpush.bf16.msrb.mxu2 %v3341_v15  ;;  %2116 = vmatmul.bf16.vlgmr.msra.gmra.mxu3 %v4268_v22  ;;  %v3292_v22 = vld [vmem:[%s4158_s6 + $0x688] sm:$0xf]  ;;  %v3037_v53 = vor.u32 %v3627_v48, %v3036_v20  ;;  %v3615_v14 = vld [vmem:[%s4158_s6 + $0x434] sm:$0xf0]  ;;  %v3389_v17 = vor.u32 %v3715_v9, %v3388_v32  ;;  %v2574_v20 = vld [vmem:[%s4158_s6 + $0xf8] sm:$0xf0] }
  0xd2   : > { %2160 = vmatpush.bf16.msrb.mxu3 %v3469_v19  ;;  %v3293_v55 = vor.u32 %v3691_v51, %v3292_v22  ;;  %v3116_v15 = vld [vmem:[%s4158_s6 + $0x528] sm:$0xf]  ;;  %v3647_v18 = vld [vmem:[%s4158_s6 + $0x534] sm:$0xf0]  ;;  %v2989_v28 = vor.u32 %v3615_v14, %v2988_v13  ;;  %v3541_v48 = vld [vmem:[%s4158_s6 + $0x1ec] sm:$0xf] }
  0xd3   : > { %2122 = vmatpush.bf16.msrb.mxu0 %v3069_v30  ;;  %v3244_v19 = vld [vmem:[%s4158_s6 + $0x628] sm:$0xf]  ;;  %v3679_v23 = vld [vmem:[%s4158_s6 + $0x634] sm:$0xf0]  ;;  %v2830_v22 = vld [vmem:[%s4158_s6 + $0x2f8] sm:$0xf0] }
  0xd4   : > { %2135 = vmatpush.bf16.msrb.mxu1 %v3197_v33  ;;  %v3372_v25 = vld [vmem:[%s4158_s6 + $0x728] sm:$0xf]  ;;  %v3711_v27 = vld [vmem:[%s4158_s6 + $0x734] sm:$0xf0]  ;;  %v3245_v35 = vor.u32 %v3679_v23, %v3244_v19  ;;  %v2833_v60 = vor.u32 %v3573_v50, %v2830_v22  ;;  %v3501_v32 = vld [vmem:[%s4158_s6 + $0xac] sm:$0xf] }
  0xd5   : > { %2148 = vmatpush.bf16.msrb.mxu2 %v3325_v34  ;;  %v2972_v30 = vld [vmem:[%s4158_s6 + $0x408] sm:$0xf]  ;;  %v3611_v33 = vld [vmem:[%s4158_s6 + $0x414] sm:$0xf0]  ;;  %v3117_v34 = vor.u32 %v3647_v18, %v3116_v15  ;;  %v3373_v41 = vor.u32 %v3711_v27, %v3372_v25  ;;  %v2542_v9 = vld [vmem:[%s4158_s6 + $0xb8] sm:$0xf0] }
  0xd6   : > { %2161 = vmatpush.bf16.msrb.mxu3 %v3453_v39  ;;  %v3100_v36 = vld [vmem:[%s4158_s6 + $0x508] sm:$0xf]  ;;  %v3643_v37 = vld [vmem:[%s4158_s6 + $0x514] sm:$0xf0]  ;;  %v2973_v49 = vor.u32 %v3611_v33, %v2972_v30  ;;  %v3565_v13 = vld [vmem:[%s4158_s6 + $0x2ac] sm:$0xf]  ;;  %v2545_v19 = vor.u32 %v3501_v32, %v2542_v9 }
  0xd7   : > { %2123 = vmatpush.bf16.msrb.mxu0 %v3053_v45  ;;  %v3228_v39 = vld [vmem:[%s4158_s6 + $0x608] sm:$0xf]  ;;  %v3675_v42 = vld [vmem:[%s4158_s6 + $0x614] sm:$0xf0]  ;;  %v3101_v26 = vor.u32 %v3643_v37, %v3100_v36  ;;  %v2798_v14 = vld [vmem:[%s4158_s6 + $0x2b8] sm:$0xf0] }
  0xd8   : > { %2136 = vmatpush.bf16.msrb.mxu1 %v3181_v46  ;;  %v3356_v43 = vld [vmem:[%s4158_s6 + $0x708] sm:$0xf]  ;;  %v3707_v44 = vld [vmem:[%s4158_s6 + $0x714] sm:$0xf0]  ;;  %v2926_v18 = vld [vmem:[%s4158_s6 + $0x3b8] sm:$0xf0]  ;;  %v2801_v25 = vor.u32 %v3565_v13, %v2798_v14 }
  0xd9   : > { %2149 = vmatpush.bf16.msrb.mxu2 %v3309_v47  ;;  %v3509_v47 = vld [vmem:[%s4158_s6 + $0xec] sm:$0xf]  ;;  %v3357_v57 = vor.u32 %v3707_v44, %v3356_v43  ;;  %v4611_v15 = vld [vmem:[#allocation1 + $0x24] sm:$0xff]  ;;  %v4619_v23 = vld [vmem:[#allocation1 + $0x2d] sm:$0xff] }
  0xda   : > { %2162 = vmatpush.bf16.msrb.mxu3 %v3437_v21  ;;  %v1870_v11 = vpop.f32.mrf.mxu0  ;;  %v2702_v21 = vld [vmem:[%s4158_s6 + $0x1f8] sm:$0xf0]  ;;  %v2577_v58 = vor.u32 %v3509_v47, %v2574_v20  ;;  %v3497_v27 = vld [vmem:[%s4158_s6 + $0x8c] sm:$0xf] }
  0xdb   : > { %2124 = vmatpush.bf16.msrb.mxu0 %v3037_v53  ;;  %v1883_v16 = vpop.f32.mrf.mxu1  ;;  %v3229_v53 = vor.u32 %v3675_v42, %v3228_v39  ;;  %v3529_v30 = vld [vmem:[%s4158_s6 + $0x18c] sm:$0xf]  ;;  %v2782_v36 = vld [vmem:[%s4158_s6 + $0x298] sm:$0xf0] }
  0xdc   : > { %2137 = vmatpush.bf16.msrb.mxu1 %v3165_v54  ;;  %v1884_v24 = vadd.f32 %v1883_v16, %v1870_v11  ;;  %v3605_v54 = vld [vmem:[%s4158_s6 + $0x3ec] sm:$0xf]  ;;  %v2945_v11 = vor.u32 %v3601_v4, %v2942_v29  ;;  %v2910_v39 = vld [vmem:[%s4158_s6 + $0x398] sm:$0xf0] }
  0xdd   : > { %2150 = vmatpush.bf16.msrb.mxu2 %v3293_v55  ;;  %v2958_v55 = vld [vmem:[%s4158_s6 + $0x3f8] sm:$0xf0]  ;;  %v4614_v16 = vld [vmem:[#allocation1 + $0x3f] sm:$0xff] }
  0xde   : > { %2163 = vmatpush.bf16.msrb.mxu3 %v3421_v59  ;;  %v2705_v59 = vor.u32 %v3541_v48, %v2702_v21  ;;  %v2961_v0 = vor.u32 %v3605_v54, %v2958_v55  ;;  %v3593_v37 = vld [vmem:[%s4158_s6 + $0x38c] sm:$0xf]  ;;  %v2766_v50 = vld [vmem:[%s4158_s6 + $0x278] sm:$0xf0] }
  0xdf   : > { %2125 = vmatpush.bf16.msrb.mxu0 %v3021_v1  ;;  %v2686_v1 = vld [vmem:[%s4158_s6 + $0x1d8] sm:$0xf0]  ;;  %v3493_v44 = vld [vmem:[%s4158_s6 + $0x6c] sm:$0xf]  ;;  %v2913_v48 = vor.u32 %v3593_v37, %v2910_v39 }
  0xe0   : > { %2138 = vmatpush.bf16.msrb.mxu1 %v3149_v2  ;;  %v1896_v40 = vpop.f32.mrf.mxu2  ;;  %v3569_v2 = vld [vmem:[%s4158_s6 + $0x2cc] sm:$0xf]  ;;  %v2689_v31 = vor.u32 %v3537_v63, %v2686_v1  ;;  %v2862_v14 = vld [vmem:[%s4158_s6 + $0x338] sm:$0xf0] }
  0xe1   : > { %2151 = vmatpush.bf16.msrb.mxu2 %v3277_v3  ;;  %v1897_v45 = vadd.f32 %v1896_v40, %v1884_v24  ;;  %v1909_v46 = vpop.f32.mrf.mxu3  ;;  %v2814_v3 = vld [vmem:[%s4158_s6 + $0x2d8] sm:$0xf0]  ;;  %v3557_v21 = vld [vmem:[%s4158_s6 + $0x26c] sm:$0xf] }
  0xe2   : > { %2164 = vmatpush.bf16.msrb.mxu3 %v3405_v6  ;;  %v1872_v52 = vpop.f32.mrf.mxu0  ;;  %v2561_v6 = vor.u32 %v3505_v61, %v2558_v62  ;;  %v2817_v8 = vor.u32 %v3569_v2, %v2814_v3  ;;  %v3589_v22 = vld [vmem:[%s4158_s6 + $0x36c] sm:$0xf]  ;;  %v2769_v54 = vor.u32 %v3557_v21, %v2766_v50  ;;  %v2750_v62 = vld [vmem:[%s4158_s6 + $0x258] sm:$0xf0] }
  0xe3   : > { %2126 = vmatpush.bf16.msrb.mxu0 %v3005_v10  ;;  %v4590_v51 = vadd.f32 %v1909_v46, %v1897_v45  ;;  %v1885_v56 = vpop.f32.mrf.mxu1  ;;  %v3533_v10 = vld [vmem:[%s4158_s6 + $0x1ac] sm:$0xf]  ;;  %v2510_v45 = vld [vmem:[%s4158_s6 + $0x78] sm:$0xf0] }
  0xe4   : > { %2139 = vmatpush.bf16.msrb.mxu1 %v3133_v38  ;;  %v4605_v38 = vld [vmem:[#allocation1 + $0x36] sm:$0xff]  ;;  %v2894_v52 = vld [vmem:[%s4158_s6 + $0x378] sm:$0xf0] }
  0xe5   : > { %2152 = vmatpush.bf16.msrb.mxu2 %v3261_v12  ;;  %v2670_v12 = vld [vmem:[%s4158_s6 + $0x1b8] sm:$0xf0]  ;;  %v3525_v46 = vld [vmem:[%s4158_s6 + $0x16c] sm:$0xf] }
  0xe6   : > { %2165 = vmatpush.bf16.msrb.mxu3 %v3389_v17  ;;  %v3597_v17 = vld [vmem:[%s4158_s6 + $0x3ac] sm:$0xf]  ;;  %v2673_v24 = vor.u32 %v3533_v10, %v2670_v12  ;;  %v2494_v56 = vld [vmem:[%s4158_s6 + $0x58] sm:$0xf0] }
  0xe7   : > { %2127 = vmatpush.bf16.msrb.mxu0 %v2989_v28  ;;  %v2526_v28 = vld [vmem:[%s4158_s6 + $0x98] sm:$0xf0]  ;;  %v2929_v33 = vor.u32 %v3597_v17, %v2926_v18  ;;  %v3489_v55 = vld [vmem:[%s4158_s6 + $0x4c] sm:$0xf] }
  0xe8   : > { %2140 = vmatpush.bf16.msrb.mxu1 %v3117_v34  ;;  %v1898_v5 = vpop.f32.mrf.mxu2  ;;  %v2654_v34 = vld [vmem:[%s4158_s6 + $0x198] sm:$0xf0]  ;;  %v2529_v40 = vor.u32 %v3497_v27, %v2526_v28  ;;  %v3553_v61 = vld [vmem:[%s4158_s6 + $0x24c] sm:$0xf]  ;;  %v2497_v3 = vor.u32 %v3489_v55, %v2494_v56 }
  0xe9   : > { %2153 = vmatpush.bf16.msrb.mxu2 %v3245_v35  ;;  %v1911_v7 = vpop.f32.mrf.mxu3  ;;  %v3561_v35 = vld [vmem:[%s4158_s6 + $0x28c] sm:$0xf]  ;;  %v2657_v42 = vor.u32 %v3529_v30, %v2654_v34  ;;  %v2878_v2 = vld [vmem:[%s4158_s6 + $0x358] sm:$0xf0] }
  0xea   : > { %2166 = vmatpush.bf16.msrb.mxu3 %v3373_v41  ;;  %v2785_v43 = vor.u32 %v3561_v35, %v2782_v36  ;;  %v3585_v1 = vld [vmem:[%s4158_s6 + $0x34c] sm:$0xf]  ;;  %v2606_v10 = vld [vmem:[%s4158_s6 + $0x138] sm:$0xf0] }
  0xeb   : > { %2128 = vmatpush.bf16.msrb.mxu0 %v2973_v49  ;;  %v1922_v41 = vpop.f32.mrf.mxu0  ;;  %v2638_v49 = vld [vmem:[%s4158_s6 + $0x178] sm:$0xf0]  ;;  %v3485_v7 = vld [vmem:[%s4158_s6 + $0x2c] sm:$0xf]  ;;  %v2881_v9 = vor.u32 %v3585_v1, %v2878_v2 }
  0xec   : > { %2141 = vmatpush.bf16.msrb.mxu1 %v3101_v26  ;;  %v1923_v47 = vadd.f32 %v1922_v41, %v4590_v51  ;;  %v1935_v20 = vpop.f32.mrf.mxu1  ;;  %v2641_v51 = vor.u32 %v3525_v46, %v2638_v49  ;;  %v2734_v12 = vld [vmem:[%s4158_s6 + $0x238] sm:$0xf0]  ;;  %v3581_v13 = vld [vmem:[%s4158_s6 + $0x32c] sm:$0xf] }
  0xed   : > { %2154 = vmatpush.bf16.msrb.mxu2 %v3229_v53  ;;  %v2513_v53 = vor.u32 %v3493_v44, %v2510_v45  ;;  %v3481_v18 = vld [vmem:[%s4158_s6 + $0xc] sm:$0xf]  ;;  %v2590_v28 = vld [vmem:[%s4158_s6 + $0x118] sm:$0xf0]  ;;  %v2865_v34 = vor.u32 %v3581_v13, %v2862_v14 }
  0xee   : > { %2167 = vmatpush.bf16.msrb.mxu3 %v3357_v57  ;;  %2129 = vmatmul.bf16.vlgmr.msrb.gmra.mxu0 %v4611_v15  ;;  %v1936_v26 = vadd.f32 %v1935_v20, %v1923_v47  ;;  %v3521_v57 = vld [vmem:[%s4158_s6 + $0x14c] sm:$0xf]  ;;  %v2718_v35 = vld [vmem:[%s4158_s6 + $0x218] sm:$0xf0] }
  0xef   : > { %2173 = vmatpush.bf16.msra.mxu0 %v2577_v58  ;;  %2142 = vmatmul.bf16.vlgmr.msrb.gmra.mxu1 %v4619_v23  ;;  %v3513_v27 = vld [vmem:[%s4158_s6 + $0x10c] sm:$0xf]  ;;  %v2846_v37 = vld [vmem:[%s4158_s6 + $0x318] sm:$0xf0] }
  0xf0   : > { %2186 = vmatpush.bf16.msra.mxu1 %v2705_v59  ;;  %2155 = vmatmul.bf16.vlgmr.msrb.gmra.mxu2 %v4605_v38  ;;  %v2897_v59 = vor.u32 %v3589_v22, %v2894_v52  ;;  %v3545_v30 = vld [vmem:[%s4158_s6 + $0x20c] sm:$0xf]  ;;  %v3086_v41 = vld [vmem:[%s4158_s6 + $0x4f8] sm:$0xf0]  ;;  %v2593_v47 = vor.u32 %v3513_v27, %v2590_v28 }
  0xf1   : > { %2199 = vmatpush.bf16.msra.mxu2 %v2833_v60  ;;  %2168 = vmatmul.bf16.vlgmr.msrb.gmra.mxu3 %v4614_v16  ;;  %v2622_v60 = vld [vmem:[%s4158_s6 + $0x158] sm:$0xf0]  ;;  %v3577_v36 = vld [vmem:[%s4158_s6 + $0x30c] sm:$0xf]  ;;  %v2721_v20 = vor.u32 %v3545_v30, %v2718_v35 }
  0xf2   : > { %2212 = vmatpush.bf16.msra.mxu3 %v2961_v0  ;;  %v2625_v5 = vor.u32 %v3521_v57, %v2622_v60  ;;  %v3214_v44 = vld [vmem:[%s4158_s6 + $0x5f8] sm:$0xf0]  ;;  %v3701_v45 = vld [vmem:[%s4158_s6 + $0x6ec] sm:$0xf]  ;;  %v2849_v21 = vor.u32 %v3577_v36, %v2846_v37 }
  0xf3   : > { %2174 = vmatpush.bf16.msra.mxu0 %v2561_v6  ;;  %v1948_v58 = vpop.f32.mrf.mxu2  ;;  %v1924_v29 = vpop.f32.mrf.mxu0  ;;  %v2753_v6 = vor.u32 %v3553_v61, %v2750_v62  ;;  %v3342_v46 = vld [vmem:[%s4158_s6 + $0x6f8] sm:$0xf0]  ;;  %v3697_v56 = vld [vmem:[%s4158_s6 + $0x6cc] sm:$0xf] }
  0xf4   : > { %2187 = vmatpush.bf16.msra.mxu1 %v2689_v31  ;;  %v1949_v63 = vadd.f32 %v1948_v58, %v1936_v26  ;;  %v1961_v0 = vpop.f32.mrf.mxu3  ;;  %v2478_v31 = vld [vmem:[%s4158_s6 + $0x38] sm:$0xf0]  ;;  %v1937_v32 = vpop.f32.mrf.mxu1  ;;  %v3345_v52 = vor.u32 %v3701_v45, %v3342_v46  ;;  %v3633_v26 = vld [vmem:[%s4158_s6 + $0x4cc] sm:$0xf] }
  0xf5   : > { %2200 = vmatpush.bf16.msra.mxu2 %v2817_v8  ;;  %v3517_v8 = vld [vmem:[%s4158_s6 + $0x12c] sm:$0xf]  ;;  %v2481_v17 = vor.u32 %v3485_v7, %v2478_v31  ;;  %v3470_v49 = vld [vmem:[%s4158_s6 + $0x7f8] sm:$0xf0] }
  0xf6   : > { %2213 = vmatpush.bf16.msra.mxu3 %v2945_v11  ;;  %v4647_v4 = vadd.f32 %v1961_v0, %v1949_v63  ;;  %v3549_v11 = vld [vmem:[%s4158_s6 + $0x22c] sm:$0xf]  ;;  %v3198_v55 = vld [vmem:[%s4158_s6 + $0x5d8] sm:$0xf0] }
  0xf7   : > { %2175 = vmatpush.bf16.msra.mxu0 %v2545_v19  ;;  %v2462_v19 = vld [vmem:[%s4158_s6 + $0x18] sm:$0xf0]  ;;  %v3729_v58 = vld [vmem:[%s4158_s6 + $0x7cc] sm:$0xf] }
  0xf8   : > { %2188 = vmatpush.bf16.msra.mxu1 %v2673_v24  ;;  %v2609_v24 = vor.u32 %v3517_v8, %v2606_v10  ;;  %v3326_v57 = vld [vmem:[%s4158_s6 + $0x6d8] sm:$0xf0]  ;;  %v3629_v63 = vld [vmem:[%s4158_s6 + $0x4ac] sm:$0xf]  ;;  %v3823_v8 = vld [vmem:[#allocation1] sm:$0xff] }
  0xf9   : > { %2201 = vmatpush.bf16.msra.mxu2 %v2801_v25  ;;  %v2737_v25 = vor.u32 %v3549_v11, %v2734_v12  ;;  %v3329_v62 = vor.u32 %v3697_v56, %v3326_v57  ;;  %v3054_v0 = vld [vmem:[%s4158_s6 + $0x4b8] sm:$0xf0]  ;;  %v3661_v1 = vld [vmem:[%s4158_s6 + $0x5ac] sm:$0xf] }
  0xfa   : > { %2214 = vmatpush.bf16.msra.mxu3 %v2929_v33  ;;  %v3182_v29 = vld [vmem:[%s4158_s6 + $0x5b8] sm:$0xf0]  ;;  %v3725_v7 = vld [vmem:[%s4158_s6 + $0x7ac] sm:$0xf] }
  0xfb   : > { %2176 = vmatpush.bf16.msra.mxu0 %v2529_v40  ;;  %v1950_v33 = vpop.f32.mrf.mxu2  ;;  %v3637_v40 = vld [vmem:[%s4158_s6 + $0x4ec] sm:$0xf]  ;;  %v3438_v31 = vld [vmem:[%s4158_s6 + $0x7b8] sm:$0xf0]  ;;  %v3185_v11 = vor.u32 %v3661_v1, %v3182_v29 }
  0xfc   : > { %2189 = vmatpush.bf16.msra.mxu1 %v2657_v42  ;;  %v1963_v39 = vpop.f32.mrf.mxu3  ;;  %v3669_v42 = vld [vmem:[%s4158_s6 + $0x5ec] sm:$0xf]  ;;  %v3089_v50 = vor.u32 %v3637_v40, %v3086_v41  ;;  %v3825_v10 = vld [vmem:[#allocation1 + $0x9] sm:$0xff] }
  0xfd   : > { %2202 = vmatpush.bf16.msra.mxu2 %v2785_v43  ;;  %v2465_v43 = vor.u32 %v3481_v18, %v2462_v19  ;;  %v3217_v22 = vor.u32 %v3669_v42, %v3214_v44  ;;  %v3824_v32 = vld [vmem:[#allocation1 + $0x1b] sm:$0xff]  ;;  %v3038_v14 = vld [vmem:[%s4158_s6 + $0x498] sm:$0xf0]  ;;  %v3441_v18 = vor.u32 %v3725_v7, %v3438_v31 }
  0xfe   : > { %2215 = vmatpush.bf16.msra.mxu3 %v2913_v48  ;;  %v3733_v48 = vld [vmem:[%s4158_s6 + $0x7ec] sm:$0xf]  ;;  %v3166_v19 = vld [vmem:[%s4158_s6 + $0x598] sm:$0xf0] }
  0xff   : > { %2177 = vmatpush.bf16.msra.mxu0 %v2513_v53  ;;  %v3070_v53 = vld [vmem:[%s4158_s6 + $0x4d8] sm:$0xf0]  ;;  %v3625_v13 = vld [vmem:[%s4158_s6 + $0x48c] sm:$0xf] }
 0x100   : > { %2190 = vmatpush.bf16.msra.mxu1 %v2641_v51  ;;  %v3665_v51 = vld [vmem:[%s4158_s6 + $0x5cc] sm:$0xf]  ;;  %v3073_v60 = vor.u32 %v3633_v26, %v3070_v53  ;;  %v3422_v28 = vld [vmem:[%s4158_s6 + $0x798] sm:$0xf0]  ;;  %v3041_v30 = vor.u32 %v3625_v13, %v3038_v14 }
 0x101   : > { %2203 = vmatpush.bf16.msra.mxu2 %v2769_v54  ;;  %v3473_v54 = vor.u32 %v3733_v48, %v3470_v49  ;;  %v3201_v61 = vor.u32 %v3665_v51, %v3198_v55  ;;  %v3721_v27 = vld [vmem:[%s4158_s6 + $0x78c] sm:$0xf]  ;;  %v3022_v37 = vld [vmem:[%s4158_s6 + $0x478] sm:$0xf0] }
 0x102   : > { %2216 = vmatpush.bf16.msra.mxu3 %v2897_v59  ;;  %v3454_v59 = vld [vmem:[%s4158_s6 + $0x7d8] sm:$0xf0]  ;;  %v3621_v36 = vld [vmem:[%s4158_s6 + $0x46c] sm:$0xf]  ;;  %v3425_v41 = vor.u32 %v3721_v27, %v3422_v28 }
 0x103   : > { %2178 = vmatpush.bf16.msra.mxu0 %v2497_v3  ;;  %v3457_v2 = vor.u32 %v3729_v58, %v3454_v59  ;;  %v3822_v3 = vld [vmem:[#allocation1 + $0x12] sm:$0xff]  ;;  %v3653_v39 = vld [vmem:[%s4158_s6 + $0x56c] sm:$0xf]  ;;  %v3150_v42 = vld [vmem:[%s4158_s6 + $0x578] sm:$0xf0] }
 0x104   : > { %2191 = vmatpush.bf16.msra.mxu1 %v2625_v5  ;;  %v3693_v5 = vld [vmem:[%s4158_s6 + $0x6ac] sm:$0xf]  ;;  %v3278_v44 = vld [vmem:[%s4158_s6 + $0x678] sm:$0xf0]  ;;  %v3153_v48 = vor.u32 %v3653_v39, %v3150_v42 }
 0x105   : > { %2204 = vmatpush.bf16.msra.mxu2 %v2753_v6  ;;  %v3310_v6 = vld [vmem:[%s4158_s6 + $0x6b8] sm:$0xf0]  ;;  %v3717_v46 = vld [vmem:[%s4158_s6 + $0x76c] sm:$0xf] }
 0x106   : > { %2217 = vmatpush.bf16.msra.mxu3 %v2881_v9  ;;  %v3057_v9 = vor.u32 %v3629_v63, %v3054_v0  ;;  %v3313_v12 = vor.u32 %v3693_v5, %v3310_v6  ;;  %v3134_v53 = vld [vmem:[%s4158_s6 + $0x558] sm:$0xf0]  ;;  %v3681_v51 = vld [vmem:[%s4158_s6 + $0x64c] sm:$0xf] }
 0x107   : > { %2179 = vmatpush.bf16.msra.mxu0 %v2481_v17  ;;  %v3657_v17 = vld [vmem:[%s4158_s6 + $0x58c] sm:$0xf]  ;;  %v3390_v58 = vld [vmem:[%s4158_s6 + $0x758] sm:$0xf0] }
 0x108   : > { %2192 = vmatpush.bf16.msra.mxu1 %v2609_v24  ;;  %v3689_v24 = vld [vmem:[%s4158_s6 + $0x68c] sm:$0xf]  ;;  %v2990_v1 = vld [vmem:[%s4158_s6 + $0x438] sm:$0xf0] }
 0x109   : > { %2205 = vmatpush.bf16.msra.mxu2 %v2737_v25  ;;  %v3294_v25 = vld [vmem:[%s4158_s6 + $0x698] sm:$0xf0]  ;;  %v3713_v57 = vld [vmem:[%s4158_s6 + $0x74c] sm:$0xf] }
 0x10a   : > { %2218 = vmatpush.bf16.msra.mxu3 %v2865_v34  ;;  %v3169_v34 = vor.u32 %v3657_v17, %v3166_v19  ;;  %v3297_v35 = vor.u32 %v3689_v24, %v3294_v25  ;;  %v3613_v0 = vld [vmem:[%s4158_s6 + $0x42c] sm:$0xf]  ;;  %v3393_v29 = vor.u32 %v3713_v57, %v3390_v58  ;;  %v3118_v5 = vld [vmem:[%s4158_s6 + $0x538] sm:$0xf0] }
 0x10b   : > { %2180 = vmatpush.bf16.msra.mxu0 %v2465_v43  ;;  %v1974_v33 = vpop.f32.mrf.mxu0  ;;  %v3685_v43 = vld [vmem:[%s4158_s6 + $0x66c] sm:$0xf]  ;;  %v3246_v7 = vld [vmem:[%s4158_s6 + $0x638] sm:$0xf0] }
 0x10c   : > { %2193 = vmatpush.bf16.msra.mxu1 %v2593_v47  ;;  %v1987_v40 = vpop.f32.mrf.mxu1  ;;  %v3406_v47 = vld [vmem:[%s4158_s6 + $0x778] sm:$0xf0]  ;;  %v3281_v49 = vor.u32 %v3685_v43, %v3278_v44  ;;  %v3677_v6 = vld [vmem:[%s4158_s6 + $0x62c] sm:$0xf] }
 0x10d   : > { %2206 = vmatpush.bf16.msra.mxu2 %v2721_v20  ;;  %v1988_v45 = vadd.f32 %v1987_v40, %v1974_v33  ;;  %v3025_v20 = vor.u32 %v3621_v36, %v3022_v37  ;;  %v3409_v26 = vor.u32 %v3717_v46, %v3406_v47  ;;  %v3709_v31 = vld [vmem:[%s4158_s6 + $0x72c] sm:$0xf]  ;;  %v3230_v24 = vld [vmem:[%s4158_s6 + $0x618] sm:$0xf0] }
 0x10e   : > { %2219 = vmatpush.bf16.msra.mxu3 %v2849_v21  ;;  %2181 = vmatmul.bf16.vlgmr.msra.gmra.mxu0 %v3823_v8  ;;  %v3617_v21 = vld [vmem:[%s4158_s6 + $0x44c] sm:$0xf]  ;;  %v3374_v8 = vld [vmem:[%s4158_s6 + $0x738] sm:$0xf0] }
 0x10f   : > { %2225 = vmatpush.bf16.msrb.mxu0 %v3089_v50  ;;  %2194 = vmatmul.bf16.vlgmr.msra.gmra.mxu1 %v3825_v10  ;;  %v3006_v50 = vld [vmem:[%s4158_s6 + $0x458] sm:$0xf0]  ;;  %v3249_v10 = vor.u32 %v3677_v6, %v3246_v7  ;;  %v3641_v13 = vld [vmem:[%s4158_s6 + $0x50c] sm:$0xf]  ;;  %v3377_v17 = vor.u32 %v3709_v31, %v3374_v8  ;;  %v288_v31 = vld [vmem:[%s250_s11] sm:$0xf] }
 0x110   : > { %2238 = vmatpush.bf16.msrb.mxu1 %v3217_v22  ;;  %2207 = vmatmul.bf16.vlgmr.msra.gmra.mxu2 %v3822_v3  ;;  %v3649_v22 = vld [vmem:[%s4158_s6 + $0x54c] sm:$0xf]  ;;  %v3009_v59 = vor.u32 %v3617_v21, %v3006_v50  ;;  %v3358_v28 = vld [vmem:[%s4158_s6 + $0x718] sm:$0xf0] }
 0x111   : > { %2251 = vmatpush.bf16.msrb.mxu2 %v3345_v52  ;;  %2220 = vmatmul.bf16.vlgmr.msra.gmra.mxu3 %v3824_v32  ;;  %v2993_v32 = vor.u32 %v3613_v0, %v2990_v1  ;;  %v3673_v19 = vld [vmem:[%s4158_s6 + $0x60c] sm:$0xf] }
 0x112   : > { %2264 = vmatpush.bf16.msrb.mxu3 %v3473_v54  ;;  %v3262_v54 = vld [vmem:[%s4158_s6 + $0x658] sm:$0xf0]  ;;  %v3705_v27 = vld [vmem:[%s4158_s6 + $0x70c] sm:$0xf] }
 0x113   : > { %2226 = vmatpush.bf16.msrb.mxu0 %v3073_v60  ;;  %v2000_v52 = vpop.f32.mrf.mxu2  ;;  %v3265_v63 = vor.u32 %v3681_v51, %v3262_v54 }
 0x114   : > { %2239 = vmatpush.bf16.msrb.mxu1 %v3201_v61  ;;  %v2001_v55 = vadd.f32 %v2000_v52, %v1988_v45  ;;  %v2013_v56 = vpop.f32.mrf.mxu3  ;;  %v1976_v61 = vpop.f32.mrf.mxu0 }
 0x115   : > { %2252 = vmatpush.bf16.msrb.mxu2 %v3329_v62  ;;  %v3137_v62 = vor.u32 %v3649_v22, %v3134_v53  ;;  %v1989_v3 = vpop.f32.mrf.mxu1 }
 0x116   : > { %2265 = vmatpush.bf16.msrb.mxu3 %v3457_v2  ;;  %v2014_v60 = vadd.f32 %v2013_v56, %v2001_v55  ;;  %v3645_v2 = vld [vmem:[%s4158_s6 + $0x52c] sm:$0xf] }
 0x117   : > { %2227 = vmatpush.bf16.msrb.mxu0 %v3057_v9  ;;  %v3121_v9 = vor.u32 %v3645_v2, %v3118_v5 }
 0x118   : > { %2240 = vmatpush.bf16.msrb.mxu1 %v3185_v11  ;;  %v3609_v11 = vld [vmem:[%s4158_s6 + $0x40c] sm:$0xf] }
 0x119   : > { %2253 = vmatpush.bf16.msrb.mxu2 %v3313_v12  ;;  %v2974_v12 = vld [vmem:[%s4158_s6 + $0x418] sm:$0xf0] }
 0x11a   : > { %2266 = vmatpush.bf16.msrb.mxu3 %v3441_v18  ;;  %v3102_v18 = vld [vmem:[%s4158_s6 + $0x518] sm:$0xf0] }
 0x11b   : > { %2228 = vmatpush.bf16.msrb.mxu0 %v3041_v30  ;;  %v2002_v14 = vpop.f32.mrf.mxu2  ;;  %v2977_v30 = vor.u32 %v3609_v11, %v2974_v12  ;;  %v3105_v33 = vor.u32 %v3641_v13, %v3102_v18  ;;  %v291_v11 = vperm.slane %v288_v31, 1  ;;  %v292_v13 = vperm.slane %v288_v31, 2 }
 0x11c   : > { %2241 = vmatpush.bf16.msrb.mxu1 %v3169_v34  ;;  %v2015_v25 = vpop.f32.mrf.mxu3  ;;  %v3233_v34 = vor.u32 %v3673_v19, %v3230_v24  ;;  %v293_v14 = vperm.slane %v288_v31, 3  ;;  %v290_v18 = vperm.slane %v288_v31, 0 }
 0x11d   : > { %2254 = vmatpush.bf16.msrb.mxu2 %v3297_v35  ;;  %v3361_v35 = vor.u32 %v3705_v27, %v3358_v28  ;;  %v294_v19 = vrot.slane %v291_v11, 6  ;;  %v295_v25 = vrot.slane %v292_v13, 4 }
 0x11e   : > { %2267 = vmatpush.bf16.msrb.mxu3 %v3425_v41  ;;  %v296_v27 = vrot.slane %v293_v14, 2 }
 0x11f   : > { %2229 = vmatpush.bf16.msrb.mxu0 %v3025_v20 }
 0x120   : > { %2242 = vmatpush.bf16.msrb.mxu1 %v3153_v48 }
 0x121   : > { %2255 = vmatpush.bf16.msrb.mxu2 %v3281_v49 }
 0x122   : > { %2268 = vmatpush.bf16.msrb.mxu3 %v3409_v26 }
 0x123   : > { %2230 = vmatpush.bf16.msrb.mxu0 %v3009_v59 }
 0x124   : > { %2243 = vmatpush.bf16.msrb.mxu1 %v3137_v62 }
 0x125   : > { %2256 = vmatpush.bf16.msrb.mxu2 %v3265_v63 }
 0x126   : > { %2269 = vmatpush.bf16.msrb.mxu3 %v3393_v29 }
 0x127   : > { %2231 = vmatpush.bf16.msrb.mxu0 %v2993_v32 }
 0x128   : > { %2244 = vmatpush.bf16.msrb.mxu1 %v3121_v9 }
 0x129   : > { %2257 = vmatpush.bf16.msrb.mxu2 %v3249_v10 }
 0x12a   : > { %2270 = vmatpush.bf16.msrb.mxu3 %v3377_v17 }
 0x12b   : > { %2232 = vmatpush.bf16.msrb.mxu0 %v2977_v30  ;;  %v2026_v36 = vpop.f32.mrf.mxu0 }
 0x12c   : > { %2245 = vmatpush.bf16.msrb.mxu1 %v3105_v33  ;;  %v2027_v37 = vadd.f32 %v2026_v36, %v2014_v60  ;;  %v2039_v39 = vpop.f32.mrf.mxu1 }
 0x12d   : > { %2258 = vmatpush.bf16.msrb.mxu2 %v3233_v34 }
 0x12e   : > { %2271 = vmatpush.bf16.msrb.mxu3 %v3361_v35  ;;  %2233 = vmatmul.bf16.vlgmr.msrb.gmra.mxu0 %v4611_v15  ;;  %v2040_v40 = vadd.f32 %v2039_v39, %v2027_v37  ;;  %v298_v37 = vsel %vm297_vm0, %v290_v18, %v294_v19  ;;  %v300_v39 = vsel %vm299_vm1, %v295_v25, %v296_v27 }
 0x12f   : > { %2246 = vmatmul.bf16.vlgmr.msrb.gmra.mxu1 %v4619_v23 }
 0x130   : > { %2259 = vmatmul.bf16.vlgmr.msrb.gmra.mxu2 %v4605_v38 }
 0x131   : > { %2272 = vmatmul.bf16.vlgmr.msrb.gmra.mxu3 %v4614_v16 }
 0x133   : > { %v2052_v41 = vpop.f32.mrf.mxu2  ;;  %v2028_v45 = vpop.f32.mrf.mxu0 }
 0x134   : > { %v2053_v42 = vadd.f32 %v2052_v41, %v2040_v40  ;;  %v2065_v43 = vpop.f32.mrf.mxu3  ;;  %v2041_v46 = vpop.f32.mrf.mxu1 }
 0x136   : > { %v2066_v44 = vadd.f32 %v2065_v43, %v2053_v42  ;;  %v302_v43 = vsel %vm301_vm2, %v298_v37, %v300_v39 }
 0x138   : > { %v2281_v47 = vrot.slane %v2066_v44, 6 }
 0x13a   : > { %v4735_v15 = vsel %vm297_vm0, %v4647_v4, %v2281_v47 }
 0x13b   : > { %v2054_v23 = vpop.f32.mrf.mxu2 }
 0x13c   : > { %v2067_v38 = vpop.f32.mrf.mxu3 }
 0x14b   : > { %v2078_v20 = vpop.f32.mrf.mxu0 }
 0x14c   : > { %v2091_v16 = vpop.f32.mrf.mxu1 }
 0x14d   : > { %v2092_v48 = vadd.f32 %v2091_v16, %v2078_v20 }
 0x153   : > { %v2104_v49 = vpop.f32.mrf.mxu2  ;;  %v2080_v52 = vpop.f32.mrf.mxu0 }
 0x154   : > { %v2105_v21 = vadd.f32 %v2104_v49, %v2092_v48  ;;  %v2117_v50 = vpop.f32.mrf.mxu3  ;;  %v2093_v26 = vpop.f32.mrf.mxu1 }
 0x156   : > { %v2118_v22 = vadd.f32 %v2117_v50, %v2105_v21 }
 0x15b   : > { %v2106_v53 = vpop.f32.mrf.mxu2 }
 0x15c   : > { %v2119_v51 = vpop.f32.mrf.mxu3 }
 0x16b   : > { %v2130_v54 = vpop.f32.mrf.mxu0 }
 0x16c   : > { %v2143_v55 = vpop.f32.mrf.mxu1  ;;  %v2131_v6 = vadd.f32 %v2130_v54, %v2118_v22 }
 0x16e   : > { %v2144_v8 = vadd.f32 %v2143_v55, %v2131_v6 }
 0x173   : > { %v2156_v56 = vpop.f32.mrf.mxu2  ;;  %v2132_v4 = vpop.f32.mrf.mxu0 }
 0x174   : > { %v2169_v57 = vpop.f32.mrf.mxu3  ;;  %v2145_v58 = vpop.f32.mrf.mxu1  ;;  %v2157_v17 = vadd.f32 %v2156_v56, %v2144_v8 }
 0x176   : > { %v2170_v30 = vadd.f32 %v2169_v57, %v2157_v17 }
 0x178   : > { %v2282_v41 = vrot.slane %v2170_v30, 4 }
 0x17b   : > { %v2158_v59 = vpop.f32.mrf.mxu2 }
 0x17c   : > { %v2171_v60 = vpop.f32.mrf.mxu3 }
 0x18b   : > { %v2182_v61 = vpop.f32.mrf.mxu0 }
 0x18c   : > { %v2195_v62 = vpop.f32.mrf.mxu1 }
 0x18d   : > { %v2196_v5 = vadd.f32 %v2195_v62, %v2182_v61 }
 0x193   : > { %v2208_v63 = vpop.f32.mrf.mxu2  ;;  %v2184_v1 = vpop.f32.mrf.mxu0 }
 0x194   : > { %v2221_v0 = vpop.f32.mrf.mxu3  ;;  %v2197_v2 = vpop.f32.mrf.mxu1  ;;  %v2209_v7 = vadd.f32 %v2208_v63, %v2196_v5 }
 0x196   : > { %v2222_v32 = vadd.f32 %v2221_v0, %v2209_v7 }
 0x19b   : > { %v2210_v3 = vpop.f32.mrf.mxu2 }
 0x19c   : > { %v2223_v29 = vpop.f32.mrf.mxu3 }
 0x1ab   : > { %v2234_v9 = vpop.f32.mrf.mxu0 }
 0x1ac   : > { %v2247_v10 = vpop.f32.mrf.mxu1  ;;  %v2235_v12 = vadd.f32 %v2234_v9, %v2222_v32 }
 0x1ae   : > { %v2248_v24 = vadd.f32 %v2247_v10, %v2235_v12 }
 0x1b3   : > { %v2260_v28 = vpop.f32.mrf.mxu2  ;;  %v2236_v35 = vpop.f32.mrf.mxu0 }
 0x1b4   : > { %v2261_v33 = vadd.f32 %v2260_v28, %v2248_v24  ;;  %v2273_v34 = vpop.f32.mrf.mxu3  ;;  %v2249_v36 = vpop.f32.mrf.mxu1 }
 0x1b6   : > { %v2274_v40 = vadd.f32 %v2273_v34, %v2261_v33 }
 0x1b8   : > { %v2283_v42 = vrot.slane %v2274_v40, 2 }
 0x1ba   : > { %v2287_v44 = vsel %vm299_vm1, %v2282_v41, %v2283_v42 }
 0x1bb   : > { %v2289_v45 = vsel %vm301_vm2, %v4735_v15, %v2287_v44  ;;  %v2262_v46 = vpop.f32.mrf.mxu2 }
 0x1bc   : > { %v2291_v47 = vadd.f32 %v2289_v45, %v302_v43  ;;  %v2275_v23 = vpop.f32.mrf.mxu3 }
 0x1be   : > { %2292 = vst [vmem:[%s278_s15] sm:$0xff] %v2291_v47 }
 0x1bf   : > { %3943 = shalt.err (!%p3940_p13)
}
 0x1c0   : > { %3745 = dma.vmem_to_hbm [thread:$0]  (%p4118_p0), %s2310_s9, 128, %s2312_s10, %s2294_s19  }
 0x1c1 PF: > { %s2323_s29 = sand.u32 1, %s3982_s12   ;;  %p3759_p4 = pnand %p2439_p3, %p4122_p2 }
 0x1c2   : > { %s2324_s11 = scalar_lea.sflag [#allocation4], %s2323_s29 }
 0x1c3   : > { %p3760_p5 = pneg %p3759_p4 }
 0x1c5   : > { %3977 = dma.done.wait (%p3760_p5), %s2324_s11, 128  }
 0x1c6   : > { %3979 = vsyncadd (%p3760_p5), %s2324_s11, 4294967168  ;;  %s20_s17 = sadd.s32 1, %s4002_s17   ;;  %s4791_s12 = smov %s3986_s13 }
 0x1c7   : > { %p17_p1 = scmp.ge.s32.totalorder %s20_s17, 4   ;;  %s4792_s13 = smov %s3990_s14 }
 0x1c8   : > { %s4793_s14 = smov %s4080_s25  ;;  %s4794_s15 = smov %s3998_s16 }
 0x1c9   : > { %s4795_s16 = smov %s4797_s18  ;;  %19 = sbr.rel (!%p17_p1) target bundleno = 7 (0x7), region = 98 }
 0x1ce   :  { %2330 = vsyncpa [#allocation3], 1 }
 0x1cf   :  { %2332 = vsyncpa [#allocation3 + $0x1], 1 }
 0x1d0   :  { %2333 = vsyncpa [#allocation6], 1 }
 0x1d1   :  { %2335 = vsyncpa [#allocation6 + $0x1], 1 }
 0x1d2   :  { %2336 = vsyncpa [#allocation4], 1 }
 0x1d3   :  { %2338 = vsyncpa [#allocation4 + $0x1], 1 }

</bundles_post_ra>
